<compile_context>
chip_gen: v5e
topology: v5e:2x2
jax: 0.10.0
libtpu: 0.0.40
codegen_flags: <defaults>
</compile_context>

<pallas_src>
import math
import numpy as np
import jax
import jax.numpy as jnp
from jax import lax
from jax.experimental import pallas as pl
from jax.experimental.pallas import tpu as pltpu

NEG = float(jnp.finfo(jnp.float32).min)  # finite stand-in for -inf (max-pool padding)


def _shift_down(v, fill):
    """Tap at index i-1 along axis 1: prepend one `fill` row, drop the last row."""
    pad = jnp.full((v.shape[0], 1, v.shape[2]), fill, v.dtype)
    return jnp.concatenate([pad, v[:, :-1, :]], axis=1)


def model_kernel(x_ref, w_ref, b_ref, out_ref, bufA, bufB, bufC):
    f32 = jnp.float32

    # ---------------- pool1: MaxPool2d(k=3, s=2, p=1, d=1), 64x64 -> 32x32 -------
    # Row pass over H (sublanes of x_ref), channel-batched strided loads.
    # Output row i uses input rows {2i-1, 2i, 2i+1}; only row -1 is padding.
    e = x_ref[:, pl.ds(0, 32, 2), :]                      # rows 2i   : 0,2,...,62
    o = x_ref[:, pl.ds(1, 32, 2), :]                      # rows 2i+1 : 1,3,...,63
    rp = jnp.maximum(jnp.maximum(e, o), _shift_down(o, NEG))     # (3, 32, 64) [h1, w]
    # Keep the transposed orientation [w, h1]; the pools are H/W symmetric, so
    # pool2's own transpose will restore [h, w] (saves the transpose-back).
    bufA[...] = jnp.swapaxes(rp, 1, 2)                    # (3, 64, 32) [w, h1]

    # Column pass over W (now the sublanes of bufA).
    e = bufA[:, pl.ds(0, 32, 2), :]
    o = bufA[:, pl.ds(1, 32, 2), :]
    bufB[...] = jnp.maximum(jnp.maximum(e, o), _shift_down(o, NEG))  # (3,32,32) [w1,h1]

    # ---------------- pool2: MaxPool2d(k=5, s=4, p=2, d=2), 32x32 -> 7x7 ---------
    # Output index j uses inputs {4j-2, 4j, 4j+2, 4j+4, 4j+6}; only 4*0-2 = -2 pads,
    # realized by shifting the {4j+2} tap down by one.
    t1 = bufB[:, pl.ds(0, 7, 4), :]                       # 0,4,...,24
    t2 = bufB[:, pl.ds(2, 7, 4), :]                       # 2,6,...,26
    t3 = bufB[:, pl.ds(4, 7, 4), :]                       # 4,8,...,28
    t4 = bufB[:, pl.ds(6, 7, 4), :]                       # 6,10,...,30
    m = jnp.maximum(jnp.maximum(t1, t2), jnp.maximum(t3, t4))
    m = jnp.maximum(m, _shift_down(t2, NEG))              # (3, 7, 32)  [w2, h1]
    bufC[...] = jnp.swapaxes(m, 1, 2)                     # (3, 32, 7)  [h1, w2]

    # Second pass over h1 (sublanes of bufC); result lands in [h2, w2] orientation.
    t1 = bufC[:, pl.ds(0, 7, 4), :]
    t2 = bufC[:, pl.ds(2, 7, 4), :]
    t3 = bufC[:, pl.ds(4, 7, 4), :]
    t4 = bufC[:, pl.ds(6, 7, 4), :]
    m = jnp.maximum(jnp.maximum(t1, t2), jnp.maximum(t3, t4))
    p2 = jnp.maximum(m, _shift_down(t2, NEG))             # (3, 7, 7)   [h2, w2]

    # ---------------- pool3: MaxPool2d(3, 1, 1), 7x7 -> 7x7 (separable shifts) ---
    rneg = jnp.full((3, 1, 7), NEG, f32)
    rm = jnp.maximum(
        p2,
        jnp.maximum(jnp.concatenate([rneg, p2[:, :-1, :]], axis=1),   # row i-1
                    jnp.concatenate([p2[:, 1:, :], rneg], axis=1)))   # row i+1
    cneg = jnp.full((3, 7, 1), NEG, f32)
    p3 = jnp.maximum(
        rm,
        jnp.maximum(jnp.concatenate([cneg, rm[:, :, :-1]], axis=2),   # col j-1
                    jnp.concatenate([rm[:, :, 1:], cneg], axis=2)))   # col j+1

    # ---------------- conv 3x3, stride 1, zero-pad 1, 3 -> 3 channels -------------
    zc = jnp.zeros((3, 7, 1), f32)
    zr = jnp.zeros((3, 1, 9), f32)
    pz = jnp.concatenate([zr, jnp.concatenate([zc, p3, zc], axis=2), zr], axis=1)  # (3,9,9)

    acc = b_ref[...]                                       # (3,7,7) bias per output channel
    for ci in range(3):
        src = jnp.broadcast_to(pz[ci][None], (3, 9, 9))    # one input plane, bcast over co
        for kh in range(3):
            for kw in range(3):
                acc = acc + w_ref[ci * 9 + kh * 3 + kw] * src[:, kh:kh + 7, kw:kw + 7]
    out_ref[...] = acc


def model_forward(x, w, b):
    # x: (1,3,64,64), w: (3,3,3,3) OIHW, b: (3,)
    x3 = x.reshape(3, 64, 64)
    # Pre-broadcast conv weights to (t=ci*9+kh*3+kw, co, 7, 7) and bias to (co, 7, 7)
    # so the in-kernel conv is fully vectorized over output channels.
    wb = jnp.broadcast_to(
        jnp.transpose(w, (1, 2, 3, 0)).reshape(27, 3)[:, :, None, None], (27, 3, 7, 7))
    bb = jnp.broadcast_to(b[:, None, None], (3, 7, 7))

    out = pl.pallas_call(
        model_kernel,
        out_shape=jax.ShapeDtypeStruct((3, 7, 7), jnp.float32),
        in_specs=[
            pl.BlockSpec(memory_space=pltpu.MemorySpace.VMEM),   # x  (3,64,64)
            pl.BlockSpec(memory_space=pltpu.MemorySpace.VMEM),   # w  (27,3,7,7)
            pl.BlockSpec(memory_space=pltpu.MemorySpace.VMEM),   # b  (3,7,7)
        ],
        out_specs=pl.BlockSpec(memory_space=pltpu.MemorySpace.VMEM),
        scratch_shapes=[
            pltpu.VMEM((3, 64, 32), jnp.float32),   # bufA: pool1 row pass, transposed [w, h1]
            pltpu.VMEM((3, 32, 32), jnp.float32),   # bufB: pool1 output [w1, h1]
            pltpu.VMEM((3, 32, 7), jnp.float32),    # bufC: pool2 pass-1 output [h1, w2]
        ],
        cost_estimate=pl.CostEstimate(
            flops=50000, transcendentals=0,
            bytes_accessed=3 * 64 * 64 * 4 + 27 * 3 * 49 * 4 + 3 * 49 * 4 + 3 * 49 * 4),
    )(x3, wb, bb)
    return out.reshape(1, 3, 7, 7)


def ref_forward(x, w, b):
    """Pure-JAX reference (XLA ops) for correctness checking."""
    def maxpool(v, k, s, p, d):
        return lax.reduce_window(
            v, -jnp.inf, lax.max,
            window_dimensions=(1, 1, k, k),
            window_strides=(1, 1, s, s),
            padding=((0, 0), (0, 0), (p, p), (p, p)),
            window_dilation=(1, 1, d, d))
    v = maxpool(x, 3, 2, 1, 1)
    v = maxpool(v, 5, 4, 2, 2)
    v = maxpool(v, 3, 1, 1, 1)
    out = lax.conv_general_dilated(
        v, w, window_strides=(1, 1), padding=((1, 1), (1, 1)),
        dimension_numbers=('NCHW', 'OIHW', 'NCHW'),
        precision=lax.Precision.HIGHEST)
    return out + b[None, :, None, None]


if __name__ == "__main__":
    key = jax.random.PRNGKey(0)
    kx, kw, kb = jax.random.split(key, 3)

    x = jax.random.normal(kx, (1, 3, 64, 64), dtype=jnp.float32)

    # Conv2d(3, 3, 3) style init: U(-1/sqrt(fan_in), 1/sqrt(fan_in)), fan_in = 27.
    bound = 1.0 / math.sqrt(3 * 3 * 3)
    w = jax.random.uniform(kw, (3, 3, 3, 3), jnp.float32, -bound, bound)
    b = jax.random.uniform(kb, (3,), jnp.float32, -bound, bound)

    out = jax.block_until_ready(model_forward(x, w, b))

    ref = jax.block_until_ready(ref_forward(x, w, b))
    assert out.shape == (1, 3, 7, 7), out.shape
    np.testing.assert_allclose(np.asarray(out), np.asarray(ref), rtol=1e-4, atol=1e-4)

    print("KERNEL_OK")
</pallas_src>

<mosaic_0001>
module attributes {stable_mosaic.version = 11 : i64} {
  func.func @model_kernel(%arg0: memref<3x64x64xf32, #tpu.memory_space<vmem>>, %arg1: memref<27x3x7x7xf32, #tpu.memory_space<vmem>>, %arg2: memref<3x7x7xf32, #tpu.memory_space<vmem>>, %arg3: memref<3x7x7xf32, #tpu.memory_space<vmem>>, %arg4: memref<3x64x32xf32, #tpu.memory_space<vmem>>, %arg5: memref<3x32x32xf32, #tpu.memory_space<vmem>>, %arg6: memref<3x32x7xf32, #tpu.memory_space<vmem>>) attributes {dimension_semantics = [], scalar_prefetch = 0 : i64, scratch_operands = 3 : i64, tpu.core_type = #tpu.core_type<tc>} {
    %c0 = arith.constant 0 : index
    %c0_0 = arith.constant 0 : index
    %c0_1 = arith.constant 0 : index
    %0 = tpu.strided_load %arg0[%c0, %c0_0, %c0_1] {strides = array<i32: 1, 2, 1>} : memref<3x64x64xf32, #tpu.memory_space<vmem>>, vector<3x32x64xf32>
    %c0_2 = arith.constant 0 : index
    %c1 = arith.constant 1 : index
    %c0_3 = arith.constant 0 : index
    %1 = tpu.strided_load %arg0[%c0_2, %c1, %c0_3] {strides = array<i32: 1, 2, 1>} : memref<3x64x64xf32, #tpu.memory_space<vmem>>, vector<3x32x64xf32>
    %2 = arith.maximumf %0, %1 : vector<3x32x64xf32>
    %cst = arith.constant -3.40282347E+38 : f32
    %3 = vector.broadcast %cst : f32 to vector<3x1x64xf32>
    %4 = vector.extract_strided_slice %1 {offsets = [0, 0, 0], sizes = [3, 31, 64], strides = [1, 1, 1]} : vector<3x32x64xf32> to vector<3x31x64xf32>
    %5 = tpu.concatenate %3, %4 in 1 : vector<3x1x64xf32>, vector<3x31x64xf32> -> vector<3x32x64xf32>
    %6 = arith.maximumf %2, %5 : vector<3x32x64xf32>
    %7 = tpu.transpose %6, [0, 2, 1] : vector<3x32x64xf32> -> vector<3x64x32xf32>
    %c0_4 = arith.constant 0 : index
    %c0_5 = arith.constant 0 : index
    %c0_6 = arith.constant 0 : index
    %8 = vector.load %arg4[%c0_4, %c0_5, %c0_6] : memref<3x64x32xf32, #tpu.memory_space<vmem>>, vector<3x64x32xf32>
    tpu.vector_store %arg4[%c0_4, %c0_5, %c0_6], %7 {strides = array<i32>} : memref<3x64x32xf32, #tpu.memory_space<vmem>>, vector<3x64x32xf32>,
    %c0_7 = arith.constant 0 : index
    %c0_8 = arith.constant 0 : index
    %c0_9 = arith.constant 0 : index
    %9 = tpu.strided_load %arg4[%c0_7, %c0_8, %c0_9] {strides = array<i32: 1, 2, 1>} : memref<3x64x32xf32, #tpu.memory_space<vmem>>, vector<3x32x32xf32>
    %c0_10 = arith.constant 0 : index
    %c1_11 = arith.constant 1 : index
    %c0_12 = arith.constant 0 : index
    %10 = tpu.strided_load %arg4[%c0_10, %c1_11, %c0_12] {strides = array<i32: 1, 2, 1>} : memref<3x64x32xf32, #tpu.memory_space<vmem>>, vector<3x32x32xf32>
    %11 = arith.maximumf %9, %10 : vector<3x32x32xf32>
    %cst_13 = arith.constant -3.40282347E+38 : f32
    %12 = vector.broadcast %cst_13 : f32 to vector<3x1x32xf32>
    %13 = vector.extract_strided_slice %10 {offsets = [0, 0, 0], sizes = [3, 31, 32], strides = [1, 1, 1]} : vector<3x32x32xf32> to vector<3x31x32xf32>
    %14 = tpu.concatenate %12, %13 in 1 : vector<3x1x32xf32>, vector<3x31x32xf32> -> vector<3x32x32xf32>
    %15 = arith.maximumf %11, %14 : vector<3x32x32xf32>
    %c0_14 = arith.constant 0 : index
    %c0_15 = arith.constant 0 : index
    %c0_16 = arith.constant 0 : index
    %16 = vector.load %arg5[%c0_14, %c0_15, %c0_16] : memref<3x32x32xf32, #tpu.memory_space<vmem>>, vector<3x32x32xf32>
    tpu.vector_store %arg5[%c0_14, %c0_15, %c0_16], %15 {strides = array<i32>} : memref<3x32x32xf32, #tpu.memory_space<vmem>>, vector<3x32x32xf32>,
    %c0_17 = arith.constant 0 : index
    %c0_18 = arith.constant 0 : index
    %c0_19 = arith.constant 0 : index
    %17 = tpu.strided_load %arg5[%c0_17, %c0_18, %c0_19] {strides = array<i32: 1, 4, 1>} : memref<3x32x32xf32, #tpu.memory_space<vmem>>, vector<3x7x32xf32>
    %c0_20 = arith.constant 0 : index
    %c2 = arith.constant 2 : index
    %c0_21 = arith.constant 0 : index
    %18 = tpu.strided_load %arg5[%c0_20, %c2, %c0_21] {strides = array<i32: 1, 4, 1>} : memref<3x32x32xf32, #tpu.memory_space<vmem>>, vector<3x7x32xf32>
    %c0_22 = arith.constant 0 : index
    %c4 = arith.constant 4 : index
    %c0_23 = arith.constant 0 : index
    %19 = tpu.strided_load %arg5[%c0_22, %c4, %c0_23] {strides = array<i32: 1, 4, 1>} : memref<3x32x32xf32, #tpu.memory_space<vmem>>, vector<3x7x32xf32>
    %c0_24 = arith.constant 0 : index
    %c6 = arith.constant 6 : index
    %c0_25 = arith.constant 0 : index
    %20 = tpu.strided_load %arg5[%c0_24, %c6, %c0_25] {strides = array<i32: 1, 4, 1>} : memref<3x32x32xf32, #tpu.memory_space<vmem>>, vector<3x7x32xf32>
    %21 = arith.maximumf %17, %18 : vector<3x7x32xf32>
    %22 = arith.maximumf %19, %20 : vector<3x7x32xf32>
    %23 = arith.maximumf %21, %22 : vector<3x7x32xf32>
    %cst_26 = arith.constant -3.40282347E+38 : f32
    %24 = vector.broadcast %cst_26 : f32 to vector<3x1x32xf32>
    %25 = vector.extract_strided_slice %18 {offsets = [0, 0, 0], sizes = [3, 6, 32], strides = [1, 1, 1]} : vector<3x7x32xf32> to vector<3x6x32xf32>
    %26 = tpu.concatenate %24, %25 in 1 : vector<3x1x32xf32>, vector<3x6x32xf32> -> vector<3x7x32xf32>
    %27 = arith.maximumf %23, %26 : vector<3x7x32xf32>
    %28 = tpu.transpose %27, [0, 2, 1] : vector<3x7x32xf32> -> vector<3x32x7xf32>
    %c0_27 = arith.constant 0 : index
    %c0_28 = arith.constant 0 : index
    %c0_29 = arith.constant 0 : index
    %29 = vector.load %arg6[%c0_27, %c0_28, %c0_29] : memref<3x32x7xf32, #tpu.memory_space<vmem>>, vector<3x32x7xf32>
    tpu.vector_store %arg6[%c0_27, %c0_28, %c0_29], %28 {strides = array<i32>} : memref<3x32x7xf32, #tpu.memory_space<vmem>>, vector<3x32x7xf32>,
    %c0_30 = arith.constant 0 : index
    %c0_31 = arith.constant 0 : index
    %c0_32 = arith.constant 0 : index
    %30 = tpu.strided_load %arg6[%c0_30, %c0_31, %c0_32] {strides = array<i32: 1, 4, 1>} : memref<3x32x7xf32, #tpu.memory_space<vmem>>, vector<3x7x7xf32>
    %c0_33 = arith.constant 0 : index
    %c2_34 = arith.constant 2 : index
    %c0_35 = arith.constant 0 : index
    %31 = tpu.strided_load %arg6[%c0_33, %c2_34, %c0_35] {strides = array<i32: 1, 4, 1>} : memref<3x32x7xf32, #tpu.memory_space<vmem>>, vector<3x7x7xf32>
    %c0_36 = arith.constant 0 : index
    %c4_37 = arith.constant 4 : index
    %c0_38 = arith.constant 0 : index
    %32 = tpu.strided_load %arg6[%c0_36, %c4_37, %c0_38] {strides = array<i32: 1, 4, 1>} : memref<3x32x7xf32, #tpu.memory_space<vmem>>, vector<3x7x7xf32>
    %c0_39 = arith.constant 0 : index
    %c6_40 = arith.constant 6 : index
    %c0_41 = arith.constant 0 : index
    %33 = tpu.strided_load %arg6[%c0_39, %c6_40, %c0_41] {strides = array<i32: 1, 4, 1>} : memref<3x32x7xf32, #tpu.memory_space<vmem>>, vector<3x7x7xf32>
    %34 = arith.maximumf %30, %31 : vector<3x7x7xf32>
    %35 = arith.maximumf %32, %33 : vector<3x7x7xf32>
    %36 = arith.maximumf %34, %35 : vector<3x7x7xf32>
    %cst_42 = arith.constant -3.40282347E+38 : f32
    %37 = vector.broadcast %cst_42 : f32 to vector<3x1x7xf32>
    %38 = vector.extract_strided_slice %31 {offsets = [0, 0, 0], sizes = [3, 6, 7], strides = [1, 1, 1]} : vector<3x7x7xf32> to vector<3x6x7xf32>
    %39 = tpu.concatenate %37, %38 in 1 : vector<3x1x7xf32>, vector<3x6x7xf32> -> vector<3x7x7xf32>
    %40 = arith.maximumf %36, %39 : vector<3x7x7xf32>
    %cst_43 = arith.constant -3.40282347E+38 : f32
    %41 = vector.broadcast %cst_43 : f32 to vector<3x1x7xf32>
    %42 = vector.extract_strided_slice %40 {offsets = [0, 0, 0], sizes = [3, 6, 7], strides = [1, 1, 1]} : vector<3x7x7xf32> to vector<3x6x7xf32>
    %43 = tpu.concatenate %41, %42 in 1 : vector<3x1x7xf32>, vector<3x6x7xf32> -> vector<3x7x7xf32>
    %44 = vector.extract_strided_slice %40 {offsets = [0, 1, 0], sizes = [3, 6, 7], strides = [1, 1, 1]} : vector<3x7x7xf32> to vector<3x6x7xf32>
    %45 = tpu.concatenate %44, %41 in 1 : vector<3x6x7xf32>, vector<3x1x7xf32> -> vector<3x7x7xf32>
    %46 = arith.maximumf %43, %45 : vector<3x7x7xf32>
    %47 = arith.maximumf %40, %46 : vector<3x7x7xf32>
    %cst_44 = arith.constant -3.40282347E+38 : f32
    %48 = vector.broadcast %cst_44 : f32 to vector<3x7x1xf32>
    %49 = vector.extract_strided_slice %47 {offsets = [0, 0, 0], sizes = [3, 7, 6], strides = [1, 1, 1]} : vector<3x7x7xf32> to vector<3x7x6xf32>
    %50 = tpu.concatenate %48, %49 in 2 : vector<3x7x1xf32>, vector<3x7x6xf32> -> vector<3x7x7xf32>
    %51 = vector.extract_strided_slice %47 {offsets = [0, 0, 1], sizes = [3, 7, 6], strides = [1, 1, 1]} : vector<3x7x7xf32> to vector<3x7x6xf32>
    %52 = tpu.concatenate %51, %48 in 2 : vector<3x7x6xf32>, vector<3x7x1xf32> -> vector<3x7x7xf32>
    %53 = arith.maximumf %50, %52 : vector<3x7x7xf32>
    %54 = arith.maximumf %47, %53 : vector<3x7x7xf32>
    %cst_45 = arith.constant 0.000000e+00 : f32
    %55 = vector.broadcast %cst_45 : f32 to vector<3x7x1xf32>
    %cst_46 = arith.constant 0.000000e+00 : f32
    %56 = vector.broadcast %cst_46 : f32 to vector<3x1x9xf32>
    %57 = tpu.concatenate %55, %54, %55 in 2 : vector<3x7x1xf32>, vector<3x7x7xf32>, vector<3x7x1xf32> -> vector<3x7x9xf32>
    %58 = tpu.concatenate %56, %57, %56 in 1 : vector<3x1x9xf32>, vector<3x7x9xf32>, vector<3x1x9xf32> -> vector<3x9x9xf32>
    %c0_47 = arith.constant 0 : index
    %c0_48 = arith.constant 0 : index
    %c0_49 = arith.constant 0 : index
    %59 = vector.load %arg2[%c0_47, %c0_48, %c0_49] : memref<3x7x7xf32, #tpu.memory_space<vmem>>, vector<3x7x7xf32>
    %60 = vector.extract_strided_slice %58 {offsets = [0, 0, 0], sizes = [1, 9, 9], strides = [1, 1, 1]} : vector<3x9x9xf32> to vector<1x9x9xf32>
    %61 = vector.shape_cast %60 : vector<1x9x9xf32> to vector<9x9xf32>
    %62 = vector.shape_cast %61 : vector<9x9xf32> to vector<1x9x9xf32>
    %63 = vector.shape_cast %62 : vector<1x9x9xf32> to vector<1x9x9xf32>
    %64 = vector.broadcast %63 : vector<1x9x9xf32> to vector<3x9x9xf32>
    %c0_50 = arith.constant 0 : index
    %c0_51 = arith.constant 0 : index
    %c0_52 = arith.constant 0 : index
    %c0_53 = arith.constant 0 : index
    %65 = vector.load %arg1[%c0_50, %c0_51, %c0_52, %c0_53] : memref<27x3x7x7xf32, #tpu.memory_space<vmem>>, vector<1x3x7x7xf32>
    %66 = vector.shape_cast %65 : vector<1x3x7x7xf32> to vector<3x7x7xf32>
    %67 = vector.extract_strided_slice %64 {offsets = [0, 0, 0], sizes = [3, 7, 7], strides = [1, 1, 1]} : vector<3x9x9xf32> to vector<3x7x7xf32>
    %68 = arith.mulf %66, %67 : vector<3x7x7xf32>
    %69 = arith.addf %59, %68 : vector<3x7x7xf32>
    %c1_54 = arith.constant 1 : index
    %c0_55 = arith.constant 0 : index
    %c0_56 = arith.constant 0 : index
    %c0_57 = arith.constant 0 : index
    %70 = vector.load %arg1[%c1_54, %c0_55, %c0_56, %c0_57] : memref<27x3x7x7xf32, #tpu.memory_space<vmem>>, vector<1x3x7x7xf32>
    %71 = vector.shape_cast %70 : vector<1x3x7x7xf32> to vector<3x7x7xf32>
    %72 = vector.extract_strided_slice %64 {offsets = [0, 0, 1], sizes = [3, 7, 7], strides = [1, 1, 1]} : vector<3x9x9xf32> to vector<3x7x7xf32>
    %73 = arith.mulf %71, %72 : vector<3x7x7xf32>
    %74 = arith.addf %69, %73 : vector<3x7x7xf32>
    %c2_58 = arith.constant 2 : index
    %c0_59 = arith.constant 0 : index
    %c0_60 = arith.constant 0 : index
    %c0_61 = arith.constant 0 : index
    %75 = vector.load %arg1[%c2_58, %c0_59, %c0_60, %c0_61] : memref<27x3x7x7xf32, #tpu.memory_space<vmem>>, vector<1x3x7x7xf32>
    %76 = vector.shape_cast %75 : vector<1x3x7x7xf32> to vector<3x7x7xf32>
    %77 = vector.extract_strided_slice %64 {offsets = [0, 0, 2], sizes = [3, 7, 7], strides = [1, 1, 1]} : vector<3x9x9xf32> to vector<3x7x7xf32>
    %78 = arith.mulf %76, %77 : vector<3x7x7xf32>
    %79 = arith.addf %74, %78 : vector<3x7x7xf32>
    %c3 = arith.constant 3 : index
    %c0_62 = arith.constant 0 : index
    %c0_63 = arith.constant 0 : index
    %c0_64 = arith.constant 0 : index
    %80 = vector.load %arg1[%c3, %c0_62, %c0_63, %c0_64] : memref<27x3x7x7xf32, #tpu.memory_space<vmem>>, vector<1x3x7x7xf32>
    %81 = vector.shape_cast %80 : vector<1x3x7x7xf32> to vector<3x7x7xf32>
    %82 = vector.extract_strided_slice %64 {offsets = [0, 1, 0], sizes = [3, 7, 7], strides = [1, 1, 1]} : vector<3x9x9xf32> to vector<3x7x7xf32>
    %83 = arith.mulf %81, %82 : vector<3x7x7xf32>
    %84 = arith.addf %79, %83 : vector<3x7x7xf32>
    %c4_65 = arith.constant 4 : index
    %c0_66 = arith.constant 0 : index
    %c0_67 = arith.constant 0 : index
    %c0_68 = arith.constant 0 : index
    %85 = vector.load %arg1[%c4_65, %c0_66, %c0_67, %c0_68] : memref<27x3x7x7xf32, #tpu.memory_space<vmem>>, vector<1x3x7x7xf32>
    %86 = vector.shape_cast %85 : vector<1x3x7x7xf32> to vector<3x7x7xf32>
    %87 = vector.extract_strided_slice %64 {offsets = [0, 1, 1], sizes = [3, 7, 7], strides = [1, 1, 1]} : vector<3x9x9xf32> to vector<3x7x7xf32>
    %88 = arith.mulf %86, %87 : vector<3x7x7xf32>
    %89 = arith.addf %84, %88 : vector<3x7x7xf32>
    %c5 = arith.constant 5 : index
    %c0_69 = arith.constant 0 : index
    %c0_70 = arith.constant 0 : index
    %c0_71 = arith.constant 0 : index
    %90 = vector.load %arg1[%c5, %c0_69, %c0_70, %c0_71] : memref<27x3x7x7xf32, #tpu.memory_space<vmem>>, vector<1x3x7x7xf32>
    %91 = vector.shape_cast %90 : vector<1x3x7x7xf32> to vector<3x7x7xf32>
    %92 = vector.extract_strided_slice %64 {offsets = [0, 1, 2], sizes = [3, 7, 7], strides = [1, 1, 1]} : vector<3x9x9xf32> to vector<3x7x7xf32>
    %93 = arith.mulf %91, %92 : vector<3x7x7xf32>
    %94 = arith.addf %89, %93 : vector<3x7x7xf32>
    %c6_72 = arith.constant 6 : index
    %c0_73 = arith.constant 0 : index
    %c0_74 = arith.constant 0 : index
    %c0_75 = arith.constant 0 : index
    %95 = vector.load %arg1[%c6_72, %c0_73, %c0_74, %c0_75] : memref<27x3x7x7xf32, #tpu.memory_space<vmem>>, vector<1x3x7x7xf32>
    %96 = vector.shape_cast %95 : vector<1x3x7x7xf32> to vector<3x7x7xf32>
    %97 = vector.extract_strided_slice %64 {offsets = [0, 2, 0], sizes = [3, 7, 7], strides = [1, 1, 1]} : vector<3x9x9xf32> to vector<3x7x7xf32>
    %98 = arith.mulf %96, %97 : vector<3x7x7xf32>
    %99 = arith.addf %94, %98 : vector<3x7x7xf32>
    %c7 = arith.constant 7 : index
    %c0_76 = arith.constant 0 : index
    %c0_77 = arith.constant 0 : index
    %c0_78 = arith.constant 0 : index
    %100 = vector.load %arg1[%c7, %c0_76, %c0_77, %c0_78] : memref<27x3x7x7xf32, #tpu.memory_space<vmem>>, vector<1x3x7x7xf32>
    %101 = vector.shape_cast %100 : vector<1x3x7x7xf32> to vector<3x7x7xf32>
    %102 = vector.extract_strided_slice %64 {offsets = [0, 2, 1], sizes = [3, 7, 7], strides = [1, 1, 1]} : vector<3x9x9xf32> to vector<3x7x7xf32>
    %103 = arith.mulf %101, %102 : vector<3x7x7xf32>
    %104 = arith.addf %99, %103 : vector<3x7x7xf32>
    %c8 = arith.constant 8 : index
    %c0_79 = arith.constant 0 : index
    %c0_80 = arith.constant 0 : index
    %c0_81 = arith.constant 0 : index
    %105 = vector.load %arg1[%c8, %c0_79, %c0_80, %c0_81] : memref<27x3x7x7xf32, #tpu.memory_space<vmem>>, vector<1x3x7x7xf32>
    %106 = vector.shape_cast %105 : vector<1x3x7x7xf32> to vector<3x7x7xf32>
    %107 = vector.extract_strided_slice %64 {offsets = [0, 2, 2], sizes = [3, 7, 7], strides = [1, 1, 1]} : vector<3x9x9xf32> to vector<3x7x7xf32>
    %108 = arith.mulf %106, %107 : vector<3x7x7xf32>
    %109 = arith.addf %104, %108 : vector<3x7x7xf32>
    %110 = vector.extract_strided_slice %58 {offsets = [1, 0, 0], sizes = [1, 9, 9], strides = [1, 1, 1]} : vector<3x9x9xf32> to vector<1x9x9xf32>
    %111 = vector.shape_cast %110 : vector<1x9x9xf32> to vector<9x9xf32>
    %112 = vector.shape_cast %111 : vector<9x9xf32> to vector<1x9x9xf32>
    %113 = vector.shape_cast %112 : vector<1x9x9xf32> to vector<1x9x9xf32>
    %114 = vector.broadcast %113 : vector<1x9x9xf32> to vector<3x9x9xf32>
    %c9 = arith.constant 9 : index
    %c0_82 = arith.constant 0 : index
    %c0_83 = arith.constant 0 : index
    %c0_84 = arith.constant 0 : index
    %115 = vector.load %arg1[%c9, %c0_82, %c0_83, %c0_84] : memref<27x3x7x7xf32, #tpu.memory_space<vmem>>, vector<1x3x7x7xf32>
    %116 = vector.shape_cast %115 : vector<1x3x7x7xf32> to vector<3x7x7xf32>
    %117 = vector.extract_strided_slice %114 {offsets = [0, 0, 0], sizes = [3, 7, 7], strides = [1, 1, 1]} : vector<3x9x9xf32> to vector<3x7x7xf32>
    %118 = arith.mulf %116, %117 : vector<3x7x7xf32>
    %119 = arith.addf %109, %118 : vector<3x7x7xf32>
    %c10 = arith.constant 10 : index
    %c0_85 = arith.constant 0 : index
    %c0_86 = arith.constant 0 : index
    %c0_87 = arith.constant 0 : index
    %120 = vector.load %arg1[%c10, %c0_85, %c0_86, %c0_87] : memref<27x3x7x7xf32, #tpu.memory_space<vmem>>, vector<1x3x7x7xf32>
    %121 = vector.shape_cast %120 : vector<1x3x7x7xf32> to vector<3x7x7xf32>
    %122 = vector.extract_strided_slice %114 {offsets = [0, 0, 1], sizes = [3, 7, 7], strides = [1, 1, 1]} : vector<3x9x9xf32> to vector<3x7x7xf32>
    %123 = arith.mulf %121, %122 : vector<3x7x7xf32>
    %124 = arith.addf %119, %123 : vector<3x7x7xf32>
    %c11 = arith.constant 11 : index
    %c0_88 = arith.constant 0 : index
    %c0_89 = arith.constant 0 : index
    %c0_90 = arith.constant 0 : index
    %125 = vector.load %arg1[%c11, %c0_88, %c0_89, %c0_90] : memref<27x3x7x7xf32, #tpu.memory_space<vmem>>, vector<1x3x7x7xf32>
    %126 = vector.shape_cast %125 : vector<1x3x7x7xf32> to vector<3x7x7xf32>
    %127 = vector.extract_strided_slice %114 {offsets = [0, 0, 2], sizes = [3, 7, 7], strides = [1, 1, 1]} : vector<3x9x9xf32> to vector<3x7x7xf32>
    %128 = arith.mulf %126, %127 : vector<3x7x7xf32>
    %129 = arith.addf %124, %128 : vector<3x7x7xf32>
    %c12 = arith.constant 12 : index
    %c0_91 = arith.constant 0 : index
    %c0_92 = arith.constant 0 : index
    %c0_93 = arith.constant 0 : index
    %130 = vector.load %arg1[%c12, %c0_91, %c0_92, %c0_93] : memref<27x3x7x7xf32, #tpu.memory_space<vmem>>, vector<1x3x7x7xf32>
    %131 = vector.shape_cast %130 : vector<1x3x7x7xf32> to vector<3x7x7xf32>
    %132 = vector.extract_strided_slice %114 {offsets = [0, 1, 0], sizes = [3, 7, 7], strides = [1, 1, 1]} : vector<3x9x9xf32> to vector<3x7x7xf32>
    %133 = arith.mulf %131, %132 : vector<3x7x7xf32>
    %134 = arith.addf %129, %133 : vector<3x7x7xf32>
    %c13 = arith.constant 13 : index
    %c0_94 = arith.constant 0 : index
    %c0_95 = arith.constant 0 : index
    %c0_96 = arith.constant 0 : index
    %135 = vector.load %arg1[%c13, %c0_94, %c0_95, %c0_96] : memref<27x3x7x7xf32, #tpu.memory_space<vmem>>, vector<1x3x7x7xf32>
    %136 = vector.shape_cast %135 : vector<1x3x7x7xf32> to vector<3x7x7xf32>
    %137 = vector.extract_strided_slice %114 {offsets = [0, 1, 1], sizes = [3, 7, 7], strides = [1, 1, 1]} : vector<3x9x9xf32> to vector<3x7x7xf32>
    %138 = arith.mulf %136, %137 : vector<3x7x7xf32>
    %139 = arith.addf %134, %138 : vector<3x7x7xf32>
    %c14 = arith.constant 14 : index
    %c0_97 = arith.constant 0 : index
    %c0_98 = arith.constant 0 : index
    %c0_99 = arith.constant 0 : index
    %140 = vector.load %arg1[%c14, %c0_97, %c0_98, %c0_99] : memref<27x3x7x7xf32, #tpu.memory_space<vmem>>, vector<1x3x7x7xf32>
    %141 = vector.shape_cast %140 : vector<1x3x7x7xf32> to vector<3x7x7xf32>
    %142 = vector.extract_strided_slice %114 {offsets = [0, 1, 2], sizes = [3, 7, 7], strides = [1, 1, 1]} : vector<3x9x9xf32> to vector<3x7x7xf32>
    %143 = arith.mulf %141, %142 : vector<3x7x7xf32>
    %144 = arith.addf %139, %143 : vector<3x7x7xf32>
    %c15 = arith.constant 15 : index
    %c0_100 = arith.constant 0 : index
    %c0_101 = arith.constant 0 : index
    %c0_102 = arith.constant 0 : index
    %145 = vector.load %arg1[%c15, %c0_100, %c0_101, %c0_102] : memref<27x3x7x7xf32, #tpu.memory_space<vmem>>, vector<1x3x7x7xf32>
    %146 = vector.shape_cast %145 : vector<1x3x7x7xf32> to vector<3x7x7xf32>
    %147 = vector.extract_strided_slice %114 {offsets = [0, 2, 0], sizes = [3, 7, 7], strides = [1, 1, 1]} : vector<3x9x9xf32> to vector<3x7x7xf32>
    %148 = arith.mulf %146, %147 : vector<3x7x7xf32>
    %149 = arith.addf %144, %148 : vector<3x7x7xf32>
    %c16 = arith.constant 16 : index
    %c0_103 = arith.constant 0 : index
    %c0_104 = arith.constant 0 : index
    %c0_105 = arith.constant 0 : index
    %150 = vector.load %arg1[%c16, %c0_103, %c0_104, %c0_105] : memref<27x3x7x7xf32, #tpu.memory_space<vmem>>, vector<1x3x7x7xf32>
    %151 = vector.shape_cast %150 : vector<1x3x7x7xf32> to vector<3x7x7xf32>
    %152 = vector.extract_strided_slice %114 {offsets = [0, 2, 1], sizes = [3, 7, 7], strides = [1, 1, 1]} : vector<3x9x9xf32> to vector<3x7x7xf32>
    %153 = arith.mulf %151, %152 : vector<3x7x7xf32>
    %154 = arith.addf %149, %153 : vector<3x7x7xf32>
    %c17 = arith.constant 17 : index
    %c0_106 = arith.constant 0 : index
    %c0_107 = arith.constant 0 : index
    %c0_108 = arith.constant 0 : index
    %155 = vector.load %arg1[%c17, %c0_106, %c0_107, %c0_108] : memref<27x3x7x7xf32, #tpu.memory_space<vmem>>, vector<1x3x7x7xf32>
    %156 = vector.shape_cast %155 : vector<1x3x7x7xf32> to vector<3x7x7xf32>
    %157 = vector.extract_strided_slice %114 {offsets = [0, 2, 2], sizes = [3, 7, 7], strides = [1, 1, 1]} : vector<3x9x9xf32> to vector<3x7x7xf32>
    %158 = arith.mulf %156, %157 : vector<3x7x7xf32>
    %159 = arith.addf %154, %158 : vector<3x7x7xf32>
    %160 = vector.extract_strided_slice %58 {offsets = [2, 0, 0], sizes = [1, 9, 9], strides = [1, 1, 1]} : vector<3x9x9xf32> to vector<1x9x9xf32>
    %161 = vector.shape_cast %160 : vector<1x9x9xf32> to vector<9x9xf32>
    %162 = vector.shape_cast %161 : vector<9x9xf32> to vector<1x9x9xf32>
    %163 = vector.shape_cast %162 : vector<1x9x9xf32> to vector<1x9x9xf32>
    %164 = vector.broadcast %163 : vector<1x9x9xf32> to vector<3x9x9xf32>
    %c18 = arith.constant 18 : index
    %c0_109 = arith.constant 0 : index
    %c0_110 = arith.constant 0 : index
    %c0_111 = arith.constant 0 : index
    %165 = vector.load %arg1[%c18, %c0_109, %c0_110, %c0_111] : memref<27x3x7x7xf32, #tpu.memory_space<vmem>>, vector<1x3x7x7xf32>
    %166 = vector.shape_cast %165 : vector<1x3x7x7xf32> to vector<3x7x7xf32>
    %167 = vector.extract_strided_slice %164 {offsets = [0, 0, 0], sizes = [3, 7, 7], strides = [1, 1, 1]} : vector<3x9x9xf32> to vector<3x7x7xf32>
    %168 = arith.mulf %166, %167 : vector<3x7x7xf32>
    %169 = arith.addf %159, %168 : vector<3x7x7xf32>
    %c19 = arith.constant 19 : index
    %c0_112 = arith.constant 0 : index
    %c0_113 = arith.constant 0 : index
    %c0_114 = arith.constant 0 : index
    %170 = vector.load %arg1[%c19, %c0_112, %c0_113, %c0_114] : memref<27x3x7x7xf32, #tpu.memory_space<vmem>>, vector<1x3x7x7xf32>
    %171 = vector.shape_cast %170 : vector<1x3x7x7xf32> to vector<3x7x7xf32>
    %172 = vector.extract_strided_slice %164 {offsets = [0, 0, 1], sizes = [3, 7, 7], strides = [1, 1, 1]} : vector<3x9x9xf32> to vector<3x7x7xf32>
    %173 = arith.mulf %171, %172 : vector<3x7x7xf32>
    %174 = arith.addf %169, %173 : vector<3x7x7xf32>
    %c20 = arith.constant 20 : index
    %c0_115 = arith.constant 0 : index
    %c0_116 = arith.constant 0 : index
    %c0_117 = arith.constant 0 : index
    %175 = vector.load %arg1[%c20, %c0_115, %c0_116, %c0_117] : memref<27x3x7x7xf32, #tpu.memory_space<vmem>>, vector<1x3x7x7xf32>
    %176 = vector.shape_cast %175 : vector<1x3x7x7xf32> to vector<3x7x7xf32>
    %177 = vector.extract_strided_slice %164 {offsets = [0, 0, 2], sizes = [3, 7, 7], strides = [1, 1, 1]} : vector<3x9x9xf32> to vector<3x7x7xf32>
    %178 = arith.mulf %176, %177 : vector<3x7x7xf32>
    %179 = arith.addf %174, %178 : vector<3x7x7xf32>
    %c21 = arith.constant 21 : index
    %c0_118 = arith.constant 0 : index
    %c0_119 = arith.constant 0 : index
    %c0_120 = arith.constant 0 : index
    %180 = vector.load %arg1[%c21, %c0_118, %c0_119, %c0_120] : memref<27x3x7x7xf32, #tpu.memory_space<vmem>>, vector<1x3x7x7xf32>
    %181 = vector.shape_cast %180 : vector<1x3x7x7xf32> to vector<3x7x7xf32>
    %182 = vector.extract_strided_slice %164 {offsets = [0, 1, 0], sizes = [3, 7, 7], strides = [1, 1, 1]} : vector<3x9x9xf32> to vector<3x7x7xf32>
    %183 = arith.mulf %181, %182 : vector<3x7x7xf32>
    %184 = arith.addf %179, %183 : vector<3x7x7xf32>
    %c22 = arith.constant 22 : index
    %c0_121 = arith.constant 0 : index
    %c0_122 = arith.constant 0 : index
    %c0_123 = arith.constant 0 : index
    %185 = vector.load %arg1[%c22, %c0_121, %c0_122, %c0_123] : memref<27x3x7x7xf32, #tpu.memory_space<vmem>>, vector<1x3x7x7xf32>
    %186 = vector.shape_cast %185 : vector<1x3x7x7xf32> to vector<3x7x7xf32>
    %187 = vector.extract_strided_slice %164 {offsets = [0, 1, 1], sizes = [3, 7, 7], strides = [1, 1, 1]} : vector<3x9x9xf32> to vector<3x7x7xf32>
    %188 = arith.mulf %186, %187 : vector<3x7x7xf32>
    %189 = arith.addf %184, %188 : vector<3x7x7xf32>
    %c23 = arith.constant 23 : index
    %c0_124 = arith.constant 0 : index
    %c0_125 = arith.constant 0 : index
    %c0_126 = arith.constant 0 : index
    %190 = vector.load %arg1[%c23, %c0_124, %c0_125, %c0_126] : memref<27x3x7x7xf32, #tpu.memory_space<vmem>>, vector<1x3x7x7xf32>
    %191 = vector.shape_cast %190 : vector<1x3x7x7xf32> to vector<3x7x7xf32>
    %192 = vector.extract_strided_slice %164 {offsets = [0, 1, 2], sizes = [3, 7, 7], strides = [1, 1, 1]} : vector<3x9x9xf32> to vector<3x7x7xf32>
    %193 = arith.mulf %191, %192 : vector<3x7x7xf32>
    %194 = arith.addf %189, %193 : vector<3x7x7xf32>
    %c24 = arith.constant 24 : index
    %c0_127 = arith.constant 0 : index
    %c0_128 = arith.constant 0 : index
    %c0_129 = arith.constant 0 : index
    %195 = vector.load %arg1[%c24, %c0_127, %c0_128, %c0_129] : memref<27x3x7x7xf32, #tpu.memory_space<vmem>>, vector<1x3x7x7xf32>
    %196 = vector.shape_cast %195 : vector<1x3x7x7xf32> to vector<3x7x7xf32>
    %197 = vector.extract_strided_slice %164 {offsets = [0, 2, 0], sizes = [3, 7, 7], strides = [1, 1, 1]} : vector<3x9x9xf32> to vector<3x7x7xf32>
    %198 = arith.mulf %196, %197 : vector<3x7x7xf32>
    %199 = arith.addf %194, %198 : vector<3x7x7xf32>
    %c25 = arith.constant 25 : index
    %c0_130 = arith.constant 0 : index
    %c0_131 = arith.constant 0 : index
    %c0_132 = arith.constant 0 : index
    %200 = vector.load %arg1[%c25, %c0_130, %c0_131, %c0_132] : memref<27x3x7x7xf32, #tpu.memory_space<vmem>>, vector<1x3x7x7xf32>
    %201 = vector.shape_cast %200 : vector<1x3x7x7xf32> to vector<3x7x7xf32>
    %202 = vector.extract_strided_slice %164 {offsets = [0, 2, 1], sizes = [3, 7, 7], strides = [1, 1, 1]} : vector<3x9x9xf32> to vector<3x7x7xf32>
    %203 = arith.mulf %201, %202 : vector<3x7x7xf32>
    %204 = arith.addf %199, %203 : vector<3x7x7xf32>
    %c26 = arith.constant 26 : index
    %c0_133 = arith.constant 0 : index
    %c0_134 = arith.constant 0 : index
    %c0_135 = arith.constant 0 : index
    %205 = vector.load %arg1[%c26, %c0_133, %c0_134, %c0_135] : memref<27x3x7x7xf32, #tpu.memory_space<vmem>>, vector<1x3x7x7xf32>
    %206 = vector.shape_cast %205 : vector<1x3x7x7xf32> to vector<3x7x7xf32>
    %207 = vector.extract_strided_slice %164 {offsets = [0, 2, 2], sizes = [3, 7, 7], strides = [1, 1, 1]} : vector<3x9x9xf32> to vector<3x7x7xf32>
    %208 = arith.mulf %206, %207 : vector<3x7x7xf32>
    %209 = arith.addf %204, %208 : vector<3x7x7xf32>
    %c0_136 = arith.constant 0 : index
    %c0_137 = arith.constant 0 : index
    %c0_138 = arith.constant 0 : index
    %210 = vector.load %arg3[%c0_136, %c0_137, %c0_138] : memref<3x7x7xf32, #tpu.memory_space<vmem>>, vector<3x7x7xf32>
    tpu.vector_store %arg3[%c0_136, %c0_137, %c0_138], %209 {strides = array<i32>} : memref<3x7x7xf32, #tpu.memory_space<vmem>>, vector<3x7x7xf32>,
    return
  }
}

</mosaic_0001>

<bundles_post_ra>
// kernel: tpu_custom_call.1
= control target key start
LH: loop header
LB: loop body
LE: loop exit
PB: predicated region body
PF: predicated region fallthrough
CT: control target
= control target key end

     0   :  { %vm86_vm0 = vcmask 1040384   ;;  %s1729_s0 = inlined_call_operand.vmem [shape: f32[3,64,64], index: 0, kind: input, shape index: {}]   ;;  %s1730_s1 = inlined_call_operand.vmem [shape: f32[27,3,7,7], index: 1, kind: input, shape index: {}]   ;;  %s1731_s2 = inlined_call_operand.vmem [shape: f32[3,7,7], index: 2, kind: input, shape index: {}]   ;;  %s1732_s3 = inlined_call_operand.hbm [shape: f32[3,7,7], index: 3, kind: output, shape index: {}]  }
   0x1   :  { %v1055_v0 = vld [vmem:[%s1729_s0 + $0x40] ss:$2 sm:$0xff]  ;;  %v1067_v1 = vld [vmem:[%s1729_s0 + $0x41] ss:$2 sm:$0xff]  ;;  %v1068_v8 = vld [vmem:[%s1729_s0 + $0x51] ss:$2 sm:$0xff] }
   0x2   :  { %v66_v2 = vmax.f32 %v1055_v0, %v1067_v1  ;;  %v94_v3 = vrot.slane %v1067_v1, 7  ;;  %v15_v4 = vld [vmem:[%s1729_s0] ss:$2 sm:$0xff]  ;;  %v1063_v5 = vld [vmem:[%s1729_s0 + $0x1] ss:$2 sm:$0xff]  ;;  %v95_v11 = vrot.slane %v1068_v8, 7 }
   0x3   :  { %v62_v6 = vmax.f32 %v15_v4, %v1063_v5  ;;  %v87_v7 = vrot.slane %v1063_v5, 7  ;;  %v1056_v10 = vld [vmem:[%s1729_s0 + $0x50] ss:$2 sm:$0xff]  ;;  %v1064_v15 = vld [vmem:[%s1729_s0 + $0x11] ss:$2 sm:$0xff] }
   0x4   :  { %v121_v9 = vsel %vm86_vm0, -3.4028235e+38, %v94_v3  ;;  %v1052_v14 = vld [vmem:[%s1729_s0 + $0x10] ss:$2 sm:$0xff]  ;;  %v88_v17 = vrot.slane %v1064_v15, 7  ;;  %v67_v18 = vmax.f32 %v1056_v10, %v1068_v8  ;;  %v96_v20 = vsel %vm86_vm0, %v94_v3, %v95_v11 }
   0x5   :  { %v127_v12 = vmax.f32 %v66_v2, %v121_v9  ;;  %v120_v13 = vsel %vm86_vm0, -3.4028235e+38, %v87_v7  ;;  %v1059_v19 = vld [vmem:[%s1729_s0 + $0x80] ss:$2 sm:$0xff]  ;;  %v63_v21 = vmax.f32 %v1052_v14, %v1064_v15  ;;  %v1071_v22 = vld [vmem:[%s1729_s0 + $0x81] ss:$2 sm:$0xff] }
   0x6   :  { %v123_v16 = vmax.f32 %v62_v6, %v120_v13  ;;  %v89_v23 = vsel %vm86_vm0, %v87_v7, %v88_v17  ;;  %v1069_v24 = vld [vmem:[%s1729_s0 + $0x61] ss:$2 sm:$0xff]  ;;  %v70_v25 = vmax.f32 %v1059_v19, %v1071_v22  ;;  %v101_v26 = vrot.slane %v1071_v22, 7  ;;  %v1060_v30 = vld [vmem:[%s1729_s0 + $0x90] ss:$2 sm:$0xff] }
   0x7   :  { %167 = vxpose.xlu1.b32.start [1/4] (short) (narrow) %v127_v12, 64  ;;  %v1065_v27 = vld [vmem:[%s1729_s0 + $0x21] ss:$2 sm:$0xff]  ;;  %v128_v28 = vmax.f32 %v67_v18, %v96_v20  ;;  %v1072_v31 = vld [vmem:[%s1729_s0 + $0x91] ss:$2 sm:$0xff]  ;;  %v124_v32 = vmax.f32 %v63_v21, %v89_v23  ;;  %v97_v34 = vrot.slane %v1069_v24, 7 }
   0x8   :  { %135 = vxpose.xlu0.b32.start [1/4] (short) (narrow) %v123_v16, 64  ;;  %v122_v29 = vsel %vm86_vm0, -3.4028235e+38, %v101_v26  ;;  %v1057_v33 = vld [vmem:[%s1729_s0 + $0x60] ss:$2 sm:$0xff]  ;;  %v102_v36 = vrot.slane %v1072_v31, 7  ;;  %v71_v39 = vmax.f32 %v1060_v30, %v1072_v31 }
   0x9   :  { %v131_v35 = vmax.f32 %v70_v25, %v122_v29  ;;  %v1053_v37 = vld [vmem:[%s1729_s0 + $0x20] ss:$2 sm:$0xff]  ;;  %v90_v38 = vrot.slane %v1065_v27, 7 }
   0xb   :  { %199 = vxpose.xlu2.b32.start [1/4] (short) (narrow) %v131_v35, 64 }
   0xc   :  { %8 = vsyncpa [#allocation6], 0  ;;  %v68_v40 = vmax.f32 %v1057_v33, %v1069_v24  ;;  %v103_v41 = vsel %vm86_vm0, %v101_v26, %v102_v36  ;;  %v98_v42 = vsel %vm86_vm0, %v95_v11, %v97_v34  ;;  %v64_v43 = vmax.f32 %v1053_v37, %v1065_v27  ;;  %v1073_v44 = vld [vmem:[%s1729_s0 + $0xa1] ss:$2 sm:$0xff]  ;;  %v1070_v46 = vld [vmem:[%s1729_s0 + $0x71] ss:$2 sm:$0xff] }
   0xd   :  { %v91_v45 = vsel %vm86_vm0, %v88_v17, %v90_v38  ;;  %v1066_v47 = vld [vmem:[%s1729_s0 + $0x31] ss:$2 sm:$0xff]  ;;  %v132_v48 = vmax.f32 %v71_v39, %v103_v41  ;;  %v1061_v50 = vld [vmem:[%s1729_s0 + $0xa0] ss:$2 sm:$0xff]  ;;  %v104_v51 = vrot.slane %v1073_v44, 7  ;;  %v99_v54 = vrot.slane %v1070_v46, 7 }
   0xe   :  { %v129_v49 = vmax.f32 %v68_v40, %v98_v42  ;;  %v125_v52 = vmax.f32 %v64_v43, %v91_v45  ;;  %v1058_v53 = vld [vmem:[%s1729_s0 + $0x70] ss:$2 sm:$0xff]  ;;  %v92_v56 = vrot.slane %v1066_v47, 7  ;;  %v72_v57 = vmax.f32 %v1061_v50, %v1073_v44  ;;  %v1074_v62 = vld [vmem:[%s1729_s0 + $0xb1] ss:$2 sm:$0xff]  ;;  %s1187_s6 = smov 127  }
   0xf   :  { %168 = vxpose.xlu1.b32.cont [2/4] (short) (narrow) %v128_v28, 64  ;;  %v1054_v55 = vld [vmem:[%s1729_s0 + $0x30] ss:$2 sm:$0xff]  ;;  %v69_v58 = vmax.f32 %v1058_v53, %v1070_v46  ;;  %v105_v59 = vsel %vm86_vm0, %v102_v36, %v104_v51  ;;  %v100_v60 = vsel %vm86_vm0, %v97_v34, %v99_v54  ;;  %v106_v3 = vrot.slane %v1074_v62, 7  ;;  %s1188_s7 = smov 126   ;;  %s1190_s30 = smov [#allocation5]  }
  0x10   :  { %136 = vxpose.xlu0.b32.cont [2/4] (short) (narrow) %v124_v32, 64  ;;  %v65_v61 = vmax.f32 %v1054_v55, %v1066_v47  ;;  %v93_v63 = vsel %vm86_vm0, %v90_v38, %v92_v56  ;;  %v133_v0 = vmax.f32 %v72_v57, %v105_v59  ;;  %v1062_v2 = vld [vmem:[%s1729_s0 + $0xb0] ss:$2 sm:$0xff]  ;;  %vm231_vm1 = vcmask 261120   ;;  %s1186_s0 = smov 1   ;;  %s1038_s4 = sshll.u32 %s1190_s30, 4  ;;  %s1039_s4 = int_to_ptr.vmem [resolvable:$true] %s1038_s4 }
  0x11   :  { %v130_v1 = vmax.f32 %v69_v58, %v100_v60  ;;  %v73_v5 = vmax.f32 %v1062_v2, %v1074_v62  ;;  %v107_v6 = vsel %vm86_vm0, %v104_v51, %v106_v3  ;;  %vm530_vm2 = vcmask 56320  }
  0x12   :  { %v126_v4 = vmax.f32 %v65_v61, %v93_v63  ;;  %vm608_vm3 = vcmask 1045504   ;;  %vm643_vm4 = vcmask 48128   ;;  %vm630_vm5 = vcmask 7168  }
  0x13   :  { %200 = vxpose.xlu2.b32.cont [2/4] (short) (narrow) %v132_v48, 64  ;;  %v134_v7 = vmax.f32 %v73_v5, %v107_v6  ;;  %vm668_vm6 = vcmask 64512   ;;  %vm1030_vm7 = vcmask 55296  }
  0x17   :  { %169 = vxpose.xlu1.b32.cont [3/4] (short) (narrow) %v129_v49, 64 }
  0x18   :  { %137 = vxpose.xlu0.b32.cont [3/4] (short) (narrow) %v125_v52, 64 }
  0x1b   :  { %201 = vxpose.xlu2.b32.cont [3/4] (short) (narrow) %v133_v0, 64 }
  0x1f   :  { %170 = vxpose.xlu1.b32.end [4/4] (short) (narrow) %v130_v1, 64 }
  0x20   :  { %138 = vxpose.xlu0.b32.end [4/4] (short) (narrow) %v126_v4, 64 }
  0x23   :  { %202 = vxpose.xlu2.b32.end [4/4] (short) (narrow) %v134_v7, 64 }
  0xa4   :  { %v215_v8 = vpop.trf.xlu2 }
  0xa5   :  { %248 = vst.msk [vmem:[#allocation2 + $0x80] sm:$0xff] %vm231_vm1, %v215_v8 }
  0xab   :  { %v183_v9 = vpop.trf.xlu1 }
  0xac   :  { %240 = vst.msk [vmem:[#allocation2 + $0x40] sm:$0xff] %vm231_vm1, %v183_v9  ;;  %v151_v10 = vpop.trf.xlu0  ;;  %v216_v11 = vpop.trf.xlu2 }
  0xad   :  { %232 = vst.msk [vmem:[#allocation2] sm:$0xff] %vm231_vm1, %v151_v10 }
  0xae   :  { %249 = vst.msk [vmem:[#allocation2 + $0x88] sm:$0xff] %vm231_vm1, %v216_v11 }
  0xb3   :  { %v184_v12 = vpop.trf.xlu1 }
  0xb4   :  { %241 = vst.msk [vmem:[#allocation2 + $0x48] sm:$0xff] %vm231_vm1, %v184_v12  ;;  %v152_v13 = vpop.trf.xlu0  ;;  %v217_v16 = vpop.trf.xlu2 }
  0xb5   :  { %233 = vst.msk [vmem:[#allocation2 + $0x8] sm:$0xff] %vm231_vm1, %v152_v13  ;;  %v272_v14 = vld [vmem:[#allocation2 + $0x80] ss:$2 sm:$0xff]  ;;  %v296_v15 = vld [vmem:[#allocation2 + $0x81] ss:$2 sm:$0xff] }
  0xb6   :  { %v311_v17 = vmax.f32 %v272_v14, %v296_v15  ;;  %v341_v18 = vrot.slane %v296_v15, 7  ;;  %250 = vst.msk [vmem:[#allocation2 + $0x90] sm:$0xff] %vm231_vm1, %v217_v16 }
  0xb8   :  { %v362_v19 = vsel %vm86_vm0, -3.4028235e+38, %v341_v18 }
  0xb9   :  { %v371_v23 = vmax.f32 %v311_v17, %v362_v19 }
  0xbb   :  { %v264_v20 = vld [vmem:[#allocation2 + $0x40] ss:$2 sm:$0xff]  ;;  %v288_v21 = vld [vmem:[#allocation2 + $0x41] ss:$2 sm:$0xff]  ;;  %v185_v22 = vpop.trf.xlu1  ;;  %383 = vst.msk [vmem:[#allocation3 + $0x40] sm:$0xff] %vm231_vm1, %v371_v23 }
  0xbc   :  { %v307_v24 = vmax.f32 %v264_v20, %v288_v21  ;;  %v334_v25 = vrot.slane %v288_v21, 7  ;;  %v256_v26 = vld [vmem:[#allocation2] ss:$2 sm:$0xff]  ;;  %v280_v27 = vld [vmem:[#allocation2 + $0x1] ss:$2 sm:$0xff]  ;;  %242 = vst.msk [vmem:[#allocation2 + $0x50] sm:$0xff] %vm231_vm1, %v185_v22  ;;  %v153_v28 = vpop.trf.xlu0  ;;  %v218_v34 = vpop.trf.xlu2 }
  0xbd   :  { %v303_v29 = vmax.f32 %v256_v26, %v280_v27  ;;  %v327_v30 = vrot.slane %v280_v27, 7  ;;  %234 = vst.msk [vmem:[#allocation2 + $0x10] sm:$0xff] %vm231_vm1, %v153_v28 }
  0xbe   :  { %v361_v31 = vsel %vm86_vm0, -3.4028235e+38, %v334_v25  ;;  %251 = vst.msk [vmem:[#allocation2 + $0x98] sm:$0xff] %vm231_vm1, %v218_v34 }
  0xbf   :  { %v367_v32 = vmax.f32 %v307_v24, %v361_v31  ;;  %v360_v33 = vsel %vm86_vm0, -3.4028235e+38, %v327_v30 }
  0xc0   :  { %v363_v35 = vmax.f32 %v303_v29, %v360_v33 }
  0xc1   :  { %379 = vst.msk [vmem:[#allocation3 + $0x20] sm:$0xff] %vm231_vm1, %v367_v32 }
  0xc2   :  { %375 = vst.msk [vmem:[#allocation3] sm:$0xff] %vm231_vm1, %v363_v35 }
  0xc3   :  { %v186_v36 = vpop.trf.xlu1 }
  0xc4   :  { %243 = vst.msk [vmem:[#allocation2 + $0x58] sm:$0xff] %vm231_vm1, %v186_v36  ;;  %v154_v37 = vpop.trf.xlu0  ;;  %v219_v40 = vpop.trf.xlu2 }
  0xc5   :  { %235 = vst.msk [vmem:[#allocation2 + $0x18] sm:$0xff] %vm231_vm1, %v154_v37  ;;  %v274_v38 = vld [vmem:[#allocation2 + $0x90] ss:$2 sm:$0xff]  ;;  %v298_v39 = vld [vmem:[#allocation2 + $0x91] ss:$2 sm:$0xff] }
  0xc6   :  { %v312_v41 = vmax.f32 %v274_v38, %v298_v39  ;;  %v342_v42 = vrot.slane %v298_v39, 7  ;;  %252 = vst.msk [vmem:[#allocation2 + $0xa0] sm:$0xff] %vm231_vm1, %v219_v40 }
  0xc8   :  { %v343_v43 = vsel %vm86_vm0, %v341_v18, %v342_v42 }
  0xc9   :  { %v372_v47 = vmax.f32 %v312_v41, %v343_v43 }
  0xcb   :  { %v266_v44 = vld [vmem:[#allocation2 + $0x50] ss:$2 sm:$0xff]  ;;  %v290_v45 = vld [vmem:[#allocation2 + $0x51] ss:$2 sm:$0xff]  ;;  %v187_v46 = vpop.trf.xlu1  ;;  %384 = vst.msk [vmem:[#allocation3 + $0x48] sm:$0xff] %vm231_vm1, %v372_v47 }
  0xcc   :  { %v308_v48 = vmax.f32 %v266_v44, %v290_v45  ;;  %v335_v49 = vrot.slane %v290_v45, 7  ;;  %v258_v50 = vld [vmem:[#allocation2 + $0x10] ss:$2 sm:$0xff]  ;;  %v282_v51 = vld [vmem:[#allocation2 + $0x11] ss:$2 sm:$0xff]  ;;  %244 = vst.msk [vmem:[#allocation2 + $0x60] sm:$0xff] %vm231_vm1, %v187_v46  ;;  %v155_v52 = vpop.trf.xlu0  ;;  %v220_v58 = vpop.trf.xlu2 }
  0xcd   :  { %v304_v53 = vmax.f32 %v258_v50, %v282_v51  ;;  %v328_v54 = vrot.slane %v282_v51, 7  ;;  %236 = vst.msk [vmem:[#allocation2 + $0x20] sm:$0xff] %vm231_vm1, %v155_v52 }
  0xce   :  { %v336_v55 = vsel %vm86_vm0, %v334_v25, %v335_v49  ;;  %253 = vst.msk [vmem:[#allocation2 + $0xa8] sm:$0xff] %vm231_vm1, %v220_v58 }
  0xcf   :  { %v368_v56 = vmax.f32 %v308_v48, %v336_v55  ;;  %v329_v57 = vsel %vm86_vm0, %v327_v30, %v328_v54 }
  0xd0   :  { %v364_v59 = vmax.f32 %v304_v53, %v329_v57 }
  0xd1   :  { %380 = vst.msk [vmem:[#allocation3 + $0x28] sm:$0xff] %vm231_vm1, %v368_v56 }
  0xd2   :  { %376 = vst.msk [vmem:[#allocation3 + $0x8] sm:$0xff] %vm231_vm1, %v364_v59 }
  0xd3   :  { %v188_v60 = vpop.trf.xlu1 }
  0xd4   :  { %245 = vst.msk [vmem:[#allocation2 + $0x68] sm:$0xff] %vm231_vm1, %v188_v60  ;;  %v156_v61 = vpop.trf.xlu0  ;;  %v221_v0 = vpop.trf.xlu2 }
  0xd5   :  { %237 = vst.msk [vmem:[#allocation2 + $0x28] sm:$0xff] %vm231_vm1, %v156_v61  ;;  %v276_v62 = vld [vmem:[#allocation2 + $0xa0] ss:$2 sm:$0xff]  ;;  %v300_v63 = vld [vmem:[#allocation2 + $0xa1] ss:$2 sm:$0xff] }
  0xd6   :  { %v313_v1 = vmax.f32 %v276_v62, %v300_v63  ;;  %v344_v2 = vrot.slane %v300_v63, 7  ;;  %254 = vst.msk [vmem:[#allocation2 + $0xb0] sm:$0xff] %vm231_vm1, %v221_v0 }
  0xd8   :  { %v345_v3 = vsel %vm86_vm0, %v342_v42, %v344_v2 }
  0xd9   :  { %v373_v7 = vmax.f32 %v313_v1, %v345_v3 }
  0xdb   :  { %v268_v4 = vld [vmem:[#allocation2 + $0x60] ss:$2 sm:$0xff]  ;;  %v292_v5 = vld [vmem:[#allocation2 + $0x61] ss:$2 sm:$0xff]  ;;  %v189_v6 = vpop.trf.xlu1  ;;  %385 = vst.msk [vmem:[#allocation3 + $0x50] sm:$0xff] %vm231_vm1, %v373_v7 }
  0xdc   :  { %v309_v8 = vmax.f32 %v268_v4, %v292_v5  ;;  %v337_v9 = vrot.slane %v292_v5, 7  ;;  %v260_v10 = vld [vmem:[#allocation2 + $0x20] ss:$2 sm:$0xff]  ;;  %v284_v11 = vld [vmem:[#allocation2 + $0x21] ss:$2 sm:$0xff]  ;;  %246 = vst.msk [vmem:[#allocation2 + $0x70] sm:$0xff] %vm231_vm1, %v189_v6  ;;  %v157_v12 = vpop.trf.xlu0  ;;  %v222_v18 = vpop.trf.xlu2 }
  0xdd   :  { %v305_v13 = vmax.f32 %v260_v10, %v284_v11  ;;  %v330_v14 = vrot.slane %v284_v11, 7  ;;  %238 = vst.msk [vmem:[#allocation2 + $0x30] sm:$0xff] %vm231_vm1, %v157_v12 }
  0xde   :  { %v338_v15 = vsel %vm86_vm0, %v335_v49, %v337_v9  ;;  %255 = vst.msk [vmem:[#allocation2 + $0xb8] sm:$0xff] %vm231_vm1, %v222_v18 }
  0xdf   :  { %v369_v16 = vmax.f32 %v309_v8, %v338_v15  ;;  %v331_v17 = vsel %vm86_vm0, %v328_v54, %v330_v14 }
  0xe0   :  { %v365_v19 = vmax.f32 %v305_v13, %v331_v17 }
  0xe1   :  { %381 = vst.msk [vmem:[#allocation3 + $0x30] sm:$0xff] %vm231_vm1, %v369_v16 }
  0xe2   :  { %377 = vst.msk [vmem:[#allocation3 + $0x10] sm:$0xff] %vm231_vm1, %v365_v19 }
  0xe3   :  { %v190_v20 = vpop.trf.xlu1 }
  0xe4   :  { %247 = vst.msk [vmem:[#allocation2 + $0x78] sm:$0xff] %vm231_vm1, %v190_v20  ;;  %v158_v21 = vpop.trf.xlu0 }
  0xe5   :  { %239 = vst.msk [vmem:[#allocation2 + $0x38] sm:$0xff] %vm231_vm1, %v158_v21  ;;  %v278_v22 = vld [vmem:[#allocation2 + $0xb0] ss:$2 sm:$0xff]  ;;  %v302_v23 = vld [vmem:[#allocation2 + $0xb1] ss:$2 sm:$0xff] }
  0xe6   :  { %v314_v24 = vmax.f32 %v278_v22, %v302_v23  ;;  %v346_v25 = vrot.slane %v302_v23, 7 }
  0xe8   :  { %v347_v26 = vsel %vm86_vm0, %v344_v2, %v346_v25 }
  0xe9   :  { %v374_v29 = vmax.f32 %v314_v24, %v347_v26 }
  0xeb   :  { %v270_v27 = vld [vmem:[#allocation2 + $0x70] ss:$2 sm:$0xff]  ;;  %v294_v28 = vld [vmem:[#allocation2 + $0x71] ss:$2 sm:$0xff]  ;;  %386 = vst.msk [vmem:[#allocation3 + $0x58] sm:$0xff] %vm231_vm1, %v374_v29 }
  0xec   :  { %v310_v30 = vmax.f32 %v270_v27, %v294_v28  ;;  %v339_v31 = vrot.slane %v294_v28, 7  ;;  %v262_v32 = vld [vmem:[#allocation2 + $0x30] ss:$2 sm:$0xff]  ;;  %v286_v33 = vld [vmem:[#allocation2 + $0x31] ss:$2 sm:$0xff] }
  0xed   :  { %v306_v34 = vmax.f32 %v262_v32, %v286_v33  ;;  %v332_v35 = vrot.slane %v286_v33, 7 }
  0xee   :  { %v340_v36 = vsel %vm86_vm0, %v337_v9, %v339_v31 }
  0xef   :  { %v370_v37 = vmax.f32 %v310_v30, %v340_v36  ;;  %v333_v38 = vsel %vm86_vm0, %v330_v14, %v332_v35 }
  0xf0   :  { %v366_v39 = vmax.f32 %v306_v34, %v333_v38 }
  0xf1   :  { %382 = vst.msk [vmem:[#allocation3 + $0x38] sm:$0xff] %vm231_vm1, %v370_v37 }
  0xf2   :  { %378 = vst.msk [vmem:[#allocation3 + $0x18] sm:$0xff] %vm231_vm1, %v366_v39  ;;  %v391_v40 = vld [vmem:[#allocation3 + $0x40] ss:$4 sm:$0x7f] }
  0xf3   :  { %v397_v41 = vld [vmem:[#allocation3 + $0x42] ss:$4 sm:$0x7f]  ;;  %v403_v42 = vld [vmem:[#allocation3 + $0x44] ss:$4 sm:$0x7f] }
  0xf4   :  { %v409_v43 = vld [vmem:[#allocation3 + $0x46] ss:$4 sm:$0x7f]  ;;  %v412_v44 = vmax.f32 %v391_v40, %v397_v41  ;;  %v424_v46 = vrot.slane %v397_v41, 7 }
  0xf5   :  { %v415_v45 = vmax.f32 %v403_v42, %v409_v43 }
  0xf6   :  { %v430_v56 = vsel %vm86_vm0, -3.4028235e+38, %v424_v46 }
  0xf7   :  { %v418_v49 = vmax.f32 %v412_v44, %v415_v45 }
  0xf8   :  { %v389_v47 = vld [vmem:[#allocation3 + $0x20] ss:$4 sm:$0x7f]  ;;  %v395_v48 = vld [vmem:[#allocation3 + $0x22] ss:$4 sm:$0x7f] }
  0xf9   :  { %v401_v50 = vld [vmem:[#allocation3 + $0x24] ss:$4 sm:$0x7f]  ;;  %v407_v51 = vld [vmem:[#allocation3 + $0x26] ss:$4 sm:$0x7f]  ;;  %v411_v52 = vmax.f32 %v389_v47, %v395_v48  ;;  %v433_v59 = vmax.f32 %v418_v49, %v430_v56 }
  0xfa   :  { %v414_v53 = vmax.f32 %v401_v50, %v407_v51  ;;  %v423_v54 = vrot.slane %v395_v48, 7  ;;  %v387_v55 = vld [vmem:[#allocation3] ss:$4 sm:$0x7f] }
  0xfb   :  { %v393_v57 = vld [vmem:[#allocation3 + $0x2] ss:$4 sm:$0x7f]  ;;  %v399_v58 = vld [vmem:[#allocation3 + $0x4] ss:$4 sm:$0x7f] }
  0xfc   :  { %v417_v60 = vmax.f32 %v411_v52, %v414_v53  ;;  %v429_v61 = vsel %vm86_vm0, -3.4028235e+38, %v423_v54  ;;  %v405_v62 = vld [vmem:[#allocation3 + $0x6] ss:$4 sm:$0x7f]  ;;  %v410_v63 = vmax.f32 %v387_v55, %v393_v57  ;;  %v422_v0 = vrot.slane %v393_v57, 7 }
  0xfd   :  { %v413_v1 = vmax.f32 %v399_v58, %v405_v62  ;;  %498 = vxpose.xlu2.b32.start.end [1/1] (short) (narrow) %v433_v59, 32 }
  0xfe   :  { %v432_v2 = vmax.f32 %v417_v60, %v429_v61  ;;  %v428_v3 = vsel %vm86_vm0, -3.4028235e+38, %v422_v0 }
  0xff   :  { %v416_v4 = vmax.f32 %v410_v63, %v413_v1 }
 0x100   :  { %466 = vxpose.xlu1.b32.start.end [1/1] (short) (narrow) %v432_v2, 32 }
 0x101   :  { %v431_v5 = vmax.f32 %v416_v4, %v428_v3 }
 0x103   :  { %434 = vxpose.xlu0.b32.start.end [1/1] (short) (narrow) %v431_v5, 32 }
 0x196   :  { %v514_v6 = vpop.trf.xlu2 }
 0x197   :  { %539 = vst.msk [vmem:[#allocation4 + $0x40] sm:$0xff] %vm530_vm2, %v514_v6 }
 0x19e   :  { %v515_v7 = vpop.trf.xlu2 }
 0x19f   :  { %540 = vst.msk [vmem:[#allocation4 + $0x48] sm:$0xff] %vm530_vm2, %v515_v7 }
 0x1a4   :  { %v482_v8 = vpop.trf.xlu1 }
 0x1a5   :  { %535 = vst.msk [vmem:[#allocation4 + $0x20] sm:$0xff] %vm530_vm2, %v482_v8 }
 0x1a6   :  { %v516_v9 = vpop.trf.xlu2 }
 0x1a7   :  { %v450_v10 = vpop.trf.xlu0  ;;  %541 = vst.msk [vmem:[#allocation4 + $0x50] sm:$0xff] %vm530_vm2, %v516_v9 }
 0x1a8   :  { %531 = vst.msk [vmem:[#allocation4] sm:$0xff] %vm530_vm2, %v450_v10 }
 0x1ac   :  { %v483_v11 = vpop.trf.xlu1 }
 0x1ad   :  { %536 = vst.msk [vmem:[#allocation4 + $0x28] sm:$0xff] %vm530_vm2, %v483_v11 }
 0x1ae   :  { %v517_v12 = vpop.trf.xlu2 }
 0x1af   :  { %v451_v13 = vpop.trf.xlu0  ;;  %542 = vst.msk [vmem:[#allocation4 + $0x58] sm:$0xff] %vm530_vm2, %v517_v12 }
 0x1b0   :  { %532 = vst.msk [vmem:[#allocation4 + $0x8] sm:$0xff] %vm530_vm2, %v451_v13 }
 0x1b4   :  { %v484_v14 = vpop.trf.xlu1 }
 0x1b5   :  { %537 = vst.msk [vmem:[#allocation4 + $0x30] sm:$0xff] %vm530_vm2, %v484_v14 }
 0x1b6   :  { %v547_v17 = vld [vmem:[#allocation4 + $0x40] ss:$4 sm:$0x7f]  ;;  %v553_v18 = vld [vmem:[#allocation4 + $0x42] ss:$4 sm:$0x7f] }
 0x1b7   :  { %v452_v15 = vpop.trf.xlu0  ;;  %v559_v19 = vld [vmem:[#allocation4 + $0x44] ss:$4 sm:$0x7f]  ;;  %v565_v20 = vld [vmem:[#allocation4 + $0x46] ss:$4 sm:$0x7f]  ;;  %v568_v22 = vmax.f32 %v547_v17, %v553_v18 }
 0x1b8   :  { %533 = vst.msk [vmem:[#allocation4 + $0x10] sm:$0xff] %vm530_vm2, %v452_v15  ;;  %v571_v23 = vmax.f32 %v559_v19, %v565_v20  ;;  %v580_v24 = vrot.slane %v553_v18, 7 }
 0x1ba   :  { %v574_v30 = vmax.f32 %v568_v22, %v571_v23  ;;  %v586_v33 = vsel %vm86_vm0, -3.4028235e+38, %v580_v24 }
 0x1bc   :  { %v485_v16 = vpop.trf.xlu1  ;;  %v589_v42 = vmax.f32 %v574_v30, %v586_v33 }
 0x1bd   :  { %538 = vst.msk [vmem:[#allocation4 + $0x38] sm:$0xff] %vm530_vm2, %v485_v16 }
 0x1be   :  { %v595_v49 = vrot.slane %v589_v42, 7  ;;  %v604_v53 = vrot.slane %v589_v42, 1 }
 0x1bf   :  { %v453_v21 = vpop.trf.xlu0 }
 0x1c0   :  { %534 = vst.msk [vmem:[#allocation4 + $0x18] sm:$0xff] %vm530_vm2, %v453_v21  ;;  %v601_v58 = vsel %vm86_vm0, -3.4028235e+38, %v595_v49  ;;  %v611_v61 = vsel %vm608_vm3, %v604_v53, -3.4028235e+38 }
 0x1c1   :  { %v614_v0 = vmax.f32 %v601_v58, %v611_v61  ;;  %v685_v53 = vld [vmem:[%s1731_s2 + $0x8] sm:$0x7f] }
 0x1c2   :  { %v1077_v58 = vld [vmem:[%s1730_s1 + $0x28] sm:$0x7f] }
 0x1c3   :  { %v617_v1 = vmax.f32 %v589_v42, %v614_v0  ;;  %v1080_v0 = vld [vmem:[%s1730_s1 + $0x40] sm:$0x7f] }
 0x1c4   :  { %v545_v25 = vld [vmem:[#allocation4 + $0x20] ss:$4 sm:$0x7f]  ;;  %v551_v26 = vld [vmem:[#allocation4 + $0x22] ss:$4 sm:$0x7f] }
 0x1c5   :  { %v557_v27 = vld [vmem:[#allocation4 + $0x24] ss:$4 sm:$0x7f]  ;;  %v563_v28 = vld [vmem:[#allocation4 + $0x26] ss:$4 sm:$0x7f]  ;;  %v567_v29 = vmax.f32 %v545_v25, %v551_v26 }
 0x1c6   :  { %v570_v31 = vmax.f32 %v557_v27, %v563_v28  ;;  %v579_v32 = vrot.slane %v551_v26, 7 }
 0x1c7   :  { %v543_v34 = vld [vmem:[#allocation4] ss:$4 sm:$0x7f]  ;;  %v549_v35 = vld [vmem:[#allocation4 + $0x2] ss:$4 sm:$0x7f] }
 0x1c8   :  { %v573_v36 = vmax.f32 %v567_v29, %v570_v31  ;;  %v585_v37 = vsel %vm86_vm0, -3.4028235e+38, %v579_v32  ;;  %v555_v38 = vld [vmem:[#allocation4 + $0x4] ss:$4 sm:$0x7f]  ;;  %v566_v39 = vmax.f32 %v543_v34, %v549_v35  ;;  %v578_v40 = vrot.slane %v549_v35, 7 }
 0x1c9   :  { %v561_v41 = vld [vmem:[#allocation4 + $0x6] ss:$4 sm:$0x7f]  ;;  %v1189_v29 = vmov 0.0  }
 0x1ca   :  { %v588_v43 = vmax.f32 %v573_v36, %v585_v37  ;;  %v569_v44 = vmax.f32 %v555_v38, %v561_v41  ;;  %v584_v45 = vsel %vm86_vm0, -3.4028235e+38, %v578_v40  ;;  %v767_v30 = vrot.slane %v1189_v29, 2 }
 0x1cc   :  { %v594_v46 = vrot.slane %v588_v43, 7  ;;  %v603_v47 = vrot.slane %v588_v43, 1  ;;  %v572_v48 = vmax.f32 %v566_v39, %v569_v44 }
 0x1ce   :  { %v600_v50 = vsel %vm86_vm0, -3.4028235e+38, %v594_v46  ;;  %v610_v51 = vsel %vm608_vm3, %v603_v47, -3.4028235e+38  ;;  %v587_v52 = vmax.f32 %v572_v48, %v584_v45  ;;  %v687_v46 = vld [vmem:[%s1730_s1] sm:$0x7f] }
 0x1cf   :  { %v613_v54 = vmax.f32 %v600_v50, %v610_v51  ;;  %v688_v47 = vld [vmem:[%s1730_s1 + $0x8] sm:$0x7f]  ;;  %v689_v48 = vld [vmem:[%s1730_s1 + $0x10] sm:$0x7f] }
 0x1d0   :  { %v593_v55 = vrot.slane %v587_v52, 7  ;;  %v602_v56 = vrot.slane %v587_v52, 1 }
 0x1d1   :  { %v616_v57 = vmax.f32 %v588_v43, %v613_v54  ;;  %v686_v54 = vld [vmem:[%s1731_s2 + $0x10] sm:$0x7f] }
 0x1d2   :  { %v599_v59 = vsel %vm86_vm0, -3.4028235e+38, %v593_v55  ;;  %v609_v60 = vsel %vm608_vm3, %v602_v56, -3.4028235e+38  ;;  %v1075_v56 = vld [vmem:[%s1730_s1 + $0x18] sm:$0x7f] }
 0x1d3   :  { %623 = vrot.lane.b32.xlu2 %v616_v57, %s1186_s0  ;;  %v612_v62 = vmax.f32 %v599_v59, %v609_v60  ;;  %v1078_v59 = vld [vmem:[%s1730_s1 + $0x30] sm:$0x7f]  ;;  %v1079_v60 = vld [vmem:[%s1730_s1 + $0x38] sm:$0x7f] }
 0x1d5   :  { %v615_v63 = vmax.f32 %v587_v52, %v612_v62  ;;  %v684_v52 = vld [vmem:[%s1731_s2] sm:$0x7f] }
 0x1d7   :  { %634 = vrot.lane.b32.xlu1 %v615_v63, %s1187_s6  ;;  %621 = vrot.lane.b32.xlu0 %v615_v63, %s1186_s0 }
 0x1db   :  { %638 = vrot.lane.b32.xlu2 %v617_v1, %s1187_s6 }
 0x1df   :  { %636 = vrot.lane.b32.xlu1 %v616_v57, %s1187_s6 }
 0x1e7   :  { %625 = vrot.lane.b32.xlu1 %v617_v1, %s1186_s0 }
 0x22d   :  { %v624_v8 = vpop.permute.xlu2 %623 }
 0x22e   :  { %v632_v10 = vsel %vm630_vm5, -3.4028235e+38, %v624_v8  ;;  %v1083_v8 = vld [vmem:[%s1730_s1 + $0x58] sm:$0x7f] }
 0x235   :  { %v639_v14 = vpop.permute.xlu2 %638 }
 0x236   :  { %v646_v16 = vsel %vm643_vm4, %v639_v14, -3.4028235e+38 }
 0x249   :  { %v635_v2 = vpop.permute.xlu1 %634  ;;  %v622_v3 = vpop.permute.xlu0 %621 }
 0x24a   :  { %v644_v4 = vsel %vm643_vm4, %v635_v2, -3.4028235e+38  ;;  %v631_v5 = vsel %vm630_vm5, -3.4028235e+38, %v622_v3 }
 0x24b   :  { %v647_v6 = vmax.f32 %v631_v5, %v644_v4 }
 0x24d   :  { %v650_v7 = vmax.f32 %v615_v63, %v647_v6  ;;  %v1081_v6 = vld [vmem:[%s1730_s1 + $0x48] sm:$0x7f] }
 0x24f   :  { %656 = vrot.lane.b32.xlu1 %v650_v7, %s1186_s0  ;;  %v1082_v7 = vld [vmem:[%s1730_s1 + $0x50] sm:$0x7f] }
 0x251   :  { %v637_v9 = vpop.permute.xlu1 %636 }
 0x252   :  { %v645_v11 = vsel %vm643_vm4, %v637_v9, -3.4028235e+38 }
 0x253   :  { %v648_v12 = vmax.f32 %v632_v10, %v645_v11  ;;  %v1084_v11 = vld [vmem:[%s1730_s1 + $0x60] sm:$0x7f] }
 0x255   :  { %v651_v13 = vmax.f32 %v616_v57, %v648_v12  ;;  %v1076_v57 = vld [vmem:[%s1730_s1 + $0x20] sm:$0x7f]  ;;  %v1085_v12 = vld [vmem:[%s1730_s1 + $0x68] sm:$0x7f] }
 0x257   :  { %658 = vrot.lane.b32.xlu0 %v651_v13, %s1186_s0 }
 0x259   :  { %v626_v15 = vpop.permute.xlu1 %625 }
 0x25a   :  { %v633_v17 = vsel %vm630_vm5, -3.4028235e+38, %v626_v15 }
 0x25b   :  { %v649_v18 = vmax.f32 %v633_v17, %v646_v16  ;;  %v1086_v17 = vld [vmem:[%s1730_s1 + $0x70] sm:$0x7f] }
 0x25d   :  { %v652_v19 = vmax.f32 %v617_v1, %v649_v18 }
 0x25f   :  { %660 = vrot.lane.b32.xlu2 %v652_v19, %s1186_s0 }
 0x2b9   :  { %v661_v35 = vpop.permute.xlu2 %660 }
 0x2ba   :  { %v667_v37 = vsel %vm630_vm5, 0.0, %v661_v35  ;;  %v1088_v35 = vld [vmem:[%s1730_s1 + $0x80] sm:$0x7f] }
 0x2bb   :  { %v671_v39 = vsel %vm668_vm6, %v667_v37, 0.0 }
 0x2bc   :  { %v677_v41 = vrot.slane %v671_v39, 7 }
 0x2be   :  { %v1429_v42 = vsel %vm86_vm0, 0.0, %v677_v41 }
 0x2bf   :  { %v1436_v43 = vrot.slane %v1429_v42, 1  ;;  %v995_v44 = vrot.slane %v1429_v42, 2 }
 0x2c1   :  { %v657_v20 = vpop.permute.xlu1 %656  ;;  %v1442_v45 = vsel %vm608_vm3, %v995_v44, %v767_v30 }
 0x2c2   :  { %v665_v21 = vsel %vm630_vm5, 0.0, %v657_v20 }
 0x2c3   :  { %v669_v22 = vsel %vm668_vm6, %v665_v21, 0.0 }
 0x2c4   :  { %v675_v23 = vrot.slane %v669_v22, 7 }
 0x2c6   :  { %v681_v24 = vsel %vm86_vm0, 0.0, %v675_v23 }
 0x2c7   :  { %714 = vrot.lane.b32.xlu0 %v681_v24, %s1188_s7  ;;  %701 = vrot.lane.b32.xlu1 %v681_v24, %s1187_s6  ;;  %v1389_v25 = vrot.slane %v681_v24, 1  ;;  %v766_v28 = vrot.slane %v681_v24, 2  ;;  %v690_v49 = vmul.f32 %v687_v46, %v681_v24  ;;  %v691_v50 = vmul.f32 %v688_v47, %v681_v24 }
 0x2c8   :  { %v692_v55 = vmul.f32 %v689_v48, %v681_v24  ;;  %v1091_v48 = vld [vmem:[%s1730_s1 + $0x98] sm:$0x7f] }
 0x2c9   :  { %739 = vrot.lane.b32.xlu2 %v1389_v25, %s1187_s6  ;;  %v659_v26 = vpop.permute.xlu0 %658  ;;  %v1396_v32 = vsel %vm608_vm3, %v766_v28, %v767_v30  ;;  %v693_v62 = vadd.f32 %v690_v49, %v684_v52  ;;  %v694_v63 = vadd.f32 %v691_v50, %v685_v53  ;;  %v729_v18 = vmul.f32 %v1081_v6, %v1389_v25  ;;  %v1092_v49 = vld [vmem:[%s1730_s1 + $0xa0] sm:$0x7f]  ;;  %v1093_v52 = vld [vmem:[%s1730_s1 + $0xa8] sm:$0x7f]  ;;  %v1099_v6 = vld [vmem:[%s1730_s1 + $0xd8] sm:$0x7f] }
 0x2ca   :  { %v666_v27 = vsel %vm630_vm5, 0.0, %v659_v26  ;;  %v695_v2 = vadd.f32 %v692_v55, %v686_v54  ;;  %v730_v19 = vmul.f32 %v1082_v7, %v1389_v25  ;;  %v731_v20 = vmul.f32 %v1083_v8, %v1389_v25  ;;  %v1094_v55 = vld [vmem:[%s1730_s1 + $0xb0] sm:$0x7f]  ;;  %v1100_v8 = vld [vmem:[%s1730_s1 + $0xe0] sm:$0x7f] }
 0x2cb   :  { %v670_v31 = vsel %vm668_vm6, %v666_v27, 0.0  ;;  %v1087_v27 = vld [vmem:[%s1730_s1 + $0x78] sm:$0x7f] }
 0x2cc   :  { %v676_v33 = vrot.slane %v670_v31, 7 }
 0x2ce   :  { %v1405_v34 = vsel %vm86_vm0, 0.0, %v676_v33 }
 0x2cf   :  { %780 = vrot.lane.b32.xlu0 %v1396_v32, %s1187_s6  ;;  %752 = vrot.lane.b32.xlu1 %v1389_v25, %s1188_s7  ;;  %v1412_v36 = vrot.slane %v1405_v34, 1  ;;  %v881_v38 = vrot.slane %v1405_v34, 2  ;;  %v1089_v25 = vld [vmem:[%s1730_s1 + $0x88] sm:$0x7f] }
 0x2d1   :  { %793 = vrot.lane.b32.xlu2 %v1396_v32, %s1188_s7  ;;  %v1420_v40 = vsel %vm608_vm3, %v881_v38, %v767_v30  ;;  %v1090_v38 = vld [vmem:[%s1730_s1 + $0x90] sm:$0x7f] }
 0x2d2   :  { %v770_v54 = vmul.f32 %v1090_v38, %v1396_v32 }
 0x2d7   :  { %830 = vrot.lane.b32.xlu0 %v1405_v34, %s1188_s7  ;;  %817 = vrot.lane.b32.xlu1 %v1405_v34, %s1187_s6 }
 0x2d9   :  { %855 = vrot.lane.b32.xlu2 %v1412_v36, %s1187_s6 }
 0x2df   :  { %894 = vrot.lane.b32.xlu0 %v1420_v40, %s1187_s6  ;;  %868 = vrot.lane.b32.xlu1 %v1412_v36, %s1188_s7 }
 0x2e1   :  { %907 = vrot.lane.b32.xlu2 %v1420_v40, %s1188_s7 }
 0x2e7   :  { %944 = vrot.lane.b32.xlu0 %v1429_v42, %s1188_s7  ;;  %931 = vrot.lane.b32.xlu1 %v1429_v42, %s1187_s6 }
 0x2e9   :  { %969 = vrot.lane.b32.xlu2 %v1436_v43, %s1187_s6 }
 0x2ef   :  { %1008 = vrot.lane.b32.xlu0 %v1442_v45, %s1187_s6  ;;  %982 = vrot.lane.b32.xlu1 %v1436_v43, %s1188_s7  ;;  %s1040_s6 = sshll.u32 %s1732_s3, 4  ;;  %s1041_s6 = int_to_ptr.hbm [resolvable:$true] %s1040_s6 }
 0x2f1   :  { %1021 = vrot.lane.b32.xlu2 %v1442_v45, %s1188_s7  ;;  %s1192_s7 = smov 8  }
 0x323   :  { %v740_v51 = vpop.permute.xlu2 %739 }
 0x324   :  { %v742_v24 = vmul.f32 %v1084_v11, %v740_v51  ;;  %v743_v26 = vmul.f32 %v1085_v12, %v740_v51  ;;  %v744_v28 = vmul.f32 %v1086_v17, %v740_v51 }
 0x32b   :  { %v794_v29 = vpop.permute.xlu2 %793 }
 0x339   :  { %v702_v61 = vpop.permute.xlu1 %701  ;;  %v715_v1 = vpop.permute.xlu0 %714 }
 0x33a   :  { %v704_v3 = vmul.f32 %v1075_v56, %v702_v61  ;;  %v705_v4 = vmul.f32 %v1076_v57, %v702_v61  ;;  %v706_v5 = vmul.f32 %v1077_v58, %v702_v61  ;;  %v717_v9 = vmul.f32 %v1078_v59, %v715_v1  ;;  %v1095_v56 = vld [vmem:[%s1730_s1 + $0xb8] sm:$0x7f]  ;;  %v1096_v57 = vld [vmem:[%s1730_s1 + $0xc0] sm:$0x7f] }
 0x33b   :  { %v718_v10 = vmul.f32 %v1079_v60, %v715_v1  ;;  %v719_v16 = vmul.f32 %v1080_v0, %v715_v1  ;;  %v771_v60 = vmul.f32 %v1091_v48, %v1396_v32  ;;  %v772_v61 = vmul.f32 %v1092_v49, %v1396_v32 }
 0x33c   :  { %v707_v13 = vadd.f32 %v704_v3, %v693_v62  ;;  %v708_v14 = vadd.f32 %v705_v4, %v694_v63  ;;  %v709_v15 = vadd.f32 %v706_v5, %v695_v2  ;;  %v1097_v62 = vld [vmem:[%s1730_s1 + $0xc8] sm:$0x7f]  ;;  %v1098_v63 = vld [vmem:[%s1730_s1 + $0xd0] sm:$0x7f]  ;;  %v796_v7 = vmul.f32 %v1096_v57, %v794_v29 }
 0x33d   :  { %v798_v11 = vmul.f32 %v1098_v63, %v794_v29  ;;  %v1115_v63 = vld [vmem:[%s1730_s1 + $0x158] sm:$0x7f] }
 0x33e   :  { %v720_v21 = vadd.f32 %v717_v9, %v707_v13  ;;  %v721_v22 = vadd.f32 %v718_v10, %v708_v14  ;;  %v722_v23 = vadd.f32 %v719_v16, %v709_v15  ;;  %v1101_v9 = vld [vmem:[%s1730_s1 + $0xe8] sm:$0x7f]  ;;  %v797_v10 = vmul.f32 %v1097_v62, %v794_v29  ;;  %v1102_v14 = vld [vmem:[%s1730_s1 + $0xf0] sm:$0x7f] }
 0x340   :  { %v732_v30 = vadd.f32 %v729_v18, %v720_v21  ;;  %v733_v31 = vadd.f32 %v730_v19, %v721_v22  ;;  %v734_v33 = vadd.f32 %v731_v20, %v722_v23  ;;  %v1103_v18 = vld [vmem:[%s1730_s1 + $0xf8] sm:$0x7f]  ;;  %v1104_v19 = vld [vmem:[%s1730_s1 + $0x100] sm:$0x7f]  ;;  %v806_v20 = vmul.f32 %v1099_v6, %v1405_v34  ;;  %v856_v21 = vpop.permute.xlu2 %855 }
 0x341   :  { %v753_v37 = vpop.permute.xlu1 %752  ;;  %v781_v39 = vpop.permute.xlu0 %780 }
 0x342   :  { %v745_v41 = vadd.f32 %v742_v24, %v732_v30  ;;  %v746_v44 = vadd.f32 %v743_v26, %v733_v31  ;;  %v747_v46 = vadd.f32 %v744_v28, %v734_v33  ;;  %v755_v47 = vmul.f32 %v1087_v27, %v753_v37  ;;  %v1105_v27 = vld [vmem:[%s1730_s1 + $0x108] sm:$0x7f]  ;;  %v1106_v30 = vld [vmem:[%s1730_s1 + $0x110] sm:$0x7f]  ;;  %v1107_v31 = vld [vmem:[%s1730_s1 + $0x118] sm:$0x7f] }
 0x343   :  { %v756_v50 = vmul.f32 %v1088_v35, %v753_v37  ;;  %v757_v51 = vmul.f32 %v1089_v25, %v753_v37  ;;  %v783_v1 = vmul.f32 %v1093_v52, %v781_v39  ;;  %v784_v4 = vmul.f32 %v1094_v55, %v781_v39  ;;  %v1113_v52 = vld [vmem:[%s1730_s1 + $0x148] sm:$0x7f] }
 0x344   :  { %v758_v53 = vadd.f32 %v755_v47, %v745_v41  ;;  %v785_v5 = vmul.f32 %v1095_v56, %v781_v39  ;;  %v807_v24 = vmul.f32 %v1100_v8, %v1405_v34  ;;  %v808_v26 = vmul.f32 %v1101_v9, %v1405_v34  ;;  %v1108_v34 = vld [vmem:[%s1730_s1 + $0x120] sm:$0x7f]  ;;  %v1109_v39 = vld [vmem:[%s1730_s1 + $0x128] sm:$0x7f]  ;;  %v1110_v41 = vld [vmem:[%s1730_s1 + $0x130] sm:$0x7f] }
 0x345   :  { %v759_v58 = vadd.f32 %v756_v50, %v746_v44  ;;  %v760_v59 = vadd.f32 %v757_v51, %v747_v46  ;;  %v1111_v46 = vld [vmem:[%s1730_s1 + $0x138] sm:$0x7f]  ;;  %v1112_v51 = vld [vmem:[%s1730_s1 + $0x140] sm:$0x7f]  ;;  %v846_v55 = vmul.f32 %v1109_v39, %v1412_v36  ;;  %v847_v56 = vmul.f32 %v1110_v41, %v1412_v36 }
 0x346   :  { %v773_v0 = vadd.f32 %v770_v54, %v758_v53  ;;  %v845_v53 = vmul.f32 %v1108_v34, %v1412_v36  ;;  %v1119_v8 = vld [vmem:[%s1730_s1 + $0x178] sm:$0x7f] }
 0x347   :  { %v774_v2 = vadd.f32 %v771_v60, %v759_v58  ;;  %v775_v3 = vadd.f32 %v772_v61, %v760_v59  ;;  %v1114_v59 = vld [vmem:[%s1730_s1 + $0x150] sm:$0x7f]  ;;  %v858_v61 = vmul.f32 %v1111_v46, %v856_v21  ;;  %v1127_v34 = vld [vmem:[%s1730_s1 + $0x1b8] sm:$0x7f] }
 0x348   :  { %v786_v32 = vadd.f32 %v783_v1, %v773_v0  ;;  %v1116_v0 = vld [vmem:[%s1730_s1 + $0x160] sm:$0x7f]  ;;  %v859_v1 = vmul.f32 %v1112_v51, %v856_v21  ;;  %v908_v9 = vpop.permute.xlu2 %907  ;;  %v1131_v51 = vld [vmem:[%s1730_s1 + $0x1d8] sm:$0x7f] }
 0x349   :  { %v787_v12 = vadd.f32 %v784_v4, %v774_v2  ;;  %v788_v13 = vadd.f32 %v785_v5, %v775_v3  ;;  %v818_v15 = vpop.permute.xlu1 %817  ;;  %v831_v16 = vpop.permute.xlu0 %830  ;;  %v860_v2 = vmul.f32 %v1113_v52, %v856_v21  ;;  %v1117_v4 = vld [vmem:[%s1730_s1 + $0x168] sm:$0x7f] }
 0x34a   :  { %v799_v17 = vadd.f32 %v796_v7, %v786_v32  ;;  %v820_v29 = vmul.f32 %v1102_v14, %v818_v15  ;;  %v821_v25 = vmul.f32 %v1103_v18, %v818_v15  ;;  %v822_v37 = vmul.f32 %v1104_v19, %v818_v15  ;;  %v1118_v32 = vld [vmem:[%s1730_s1 + $0x170] sm:$0x7f]  ;;  %v1120_v14 = vld [vmem:[%s1730_s1 + $0x180] sm:$0x7f]  ;;  %v1123_v19 = vld [vmem:[%s1730_s1 + $0x198] sm:$0x7f] }
 0x34b   :  { %v800_v22 = vadd.f32 %v797_v10, %v787_v12  ;;  %v801_v23 = vadd.f32 %v798_v11, %v788_v13  ;;  %v833_v44 = vmul.f32 %v1105_v27, %v831_v16  ;;  %v834_v49 = vmul.f32 %v1106_v30, %v831_v16  ;;  %v1122_v18 = vld [vmem:[%s1730_s1 + $0x190] sm:$0x7f] }
 0x34c   :  { %v809_v28 = vadd.f32 %v806_v20, %v799_v17  ;;  %v835_v50 = vmul.f32 %v1107_v31, %v831_v16  ;;  %v884_v16 = vmul.f32 %v1117_v4, %v1420_v40  ;;  %v1121_v17 = vld [vmem:[%s1730_s1 + $0x188] sm:$0x7f] }
 0x34d   :  { %v810_v33 = vadd.f32 %v807_v24, %v800_v22  ;;  %v811_v35 = vadd.f32 %v808_v26, %v801_v23  ;;  %v885_v22 = vmul.f32 %v1118_v32, %v1420_v40  ;;  %v886_v23 = vmul.f32 %v1119_v8, %v1420_v40  ;;  %v1124_v24 = vld [vmem:[%s1730_s1 + $0x1a0] sm:$0x7f]  ;;  %v1125_v26 = vld [vmem:[%s1730_s1 + $0x1a8] sm:$0x7f] }
 0x34e   :  { %v823_v38 = vadd.f32 %v820_v29, %v809_v28  ;;  %v910_v40 = vmul.f32 %v1123_v19, %v908_v9  ;;  %v911_v39 = vmul.f32 %v1124_v24, %v908_v9  ;;  %v912_v41 = vmul.f32 %v1125_v26, %v908_v9  ;;  %v1137_v4 = vld [vmem:[%s1730_s1 + $0x208] sm:$0x7f] }
 0x34f   :  { %v824_v47 = vadd.f32 %v821_v25, %v810_v33  ;;  %v825_v48 = vadd.f32 %v822_v37, %v811_v35  ;;  %v1126_v35 = vld [vmem:[%s1730_s1 + $0x1b0] sm:$0x7f] }
 0x350   :  { %v836_v54 = vadd.f32 %v833_v44, %v823_v38  ;;  %v1128_v38 = vld [vmem:[%s1730_s1 + $0x1c0] sm:$0x7f] }
 0x351   :  { %v837_v57 = vadd.f32 %v834_v49, %v824_v47  ;;  %v838_v58 = vadd.f32 %v835_v50, %v825_v48  ;;  %v869_v60 = vpop.permute.xlu1 %868  ;;  %v895_v5 = vpop.permute.xlu0 %894  ;;  %v1129_v47 = vld [vmem:[%s1730_s1 + $0x1c8] sm:$0x7f]  ;;  %v920_v49 = vmul.f32 %v1126_v35, %v1429_v42  ;;  %v1130_v50 = vld [vmem:[%s1730_s1 + $0x1d0] sm:$0x7f] }
 0x352   :  { %v848_v62 = vadd.f32 %v845_v53, %v836_v54  ;;  %v871_v7 = vmul.f32 %v1114_v59, %v869_v60  ;;  %v872_v12 = vmul.f32 %v1115_v63, %v869_v60  ;;  %v873_v13 = vmul.f32 %v1116_v0, %v869_v60  ;;  %v1133_v60 = vld [vmem:[%s1730_s1 + $0x1e8] sm:$0x7f] }
 0x353   :  { %v849_v36 = vadd.f32 %v846_v55, %v837_v57  ;;  %v850_v3 = vadd.f32 %v847_v56, %v838_v58  ;;  %v897_v28 = vmul.f32 %v1120_v14, %v895_v5  ;;  %v898_v31 = vmul.f32 %v1121_v17, %v895_v5  ;;  %v1132_v56 = vld [vmem:[%s1730_s1 + $0x1e0] sm:$0x7f] }
 0x354   :  { %v861_v6 = vadd.f32 %v858_v61, %v848_v62  ;;  %v899_v33 = vmul.f32 %v1122_v18, %v895_v5  ;;  %v921_v54 = vmul.f32 %v1127_v34, %v1429_v42  ;;  %v922_v55 = vmul.f32 %v1128_v38, %v1429_v42  ;;  %v1134_v61 = vld [vmem:[%s1730_s1 + $0x1f0] sm:$0x7f]  ;;  %v970_v62 = vpop.permute.xlu2 %969  ;;  %v1141_v18 = vld [vmem:[%s1730_s1 + $0x228] sm:$0x7f]  ;;  %v1147_v34 = vld [vmem:[%s1730_s1 + $0x258] sm:$0x7f] }
 0x355   :  { %v862_v10 = vadd.f32 %v859_v1, %v849_v36  ;;  %v863_v11 = vadd.f32 %v860_v2, %v850_v3  ;;  %v1135_v2 = vld [vmem:[%s1730_s1 + $0x1f8] sm:$0x7f]  ;;  %v1136_v3 = vld [vmem:[%s1730_s1 + $0x200] sm:$0x7f] }
 0x356   :  { %v874_v15 = vadd.f32 %v871_v7, %v861_v6  ;;  %v1138_v6 = vld [vmem:[%s1730_s1 + $0x210] sm:$0x7f]  ;;  %v960_v14 = vmul.f32 %v1136_v3, %v1436_v43 }
 0x357   :  { %v875_v20 = vadd.f32 %v872_v12, %v862_v10  ;;  %v876_v21 = vadd.f32 %v873_v13, %v863_v11  ;;  %v1139_v10 = vld [vmem:[%s1730_s1 + $0x218] sm:$0x7f]  ;;  %v1140_v11 = vld [vmem:[%s1730_s1 + $0x220] sm:$0x7f]  ;;  %v959_v12 = vmul.f32 %v1135_v2, %v1436_v43 }
 0x358   :  { %v887_v27 = vadd.f32 %v884_v16, %v874_v15  ;;  %v961_v15 = vmul.f32 %v1137_v4, %v1436_v43  ;;  %v973_v24 = vmul.f32 %v1139_v10, %v970_v62  ;;  %v974_v26 = vmul.f32 %v1140_v11, %v970_v62 }
 0x359   :  { %v888_v29 = vadd.f32 %v885_v22, %v875_v20  ;;  %v889_v30 = vadd.f32 %v886_v23, %v876_v21  ;;  %v932_v25 = vpop.permute.xlu1 %931  ;;  %v945_v57 = vpop.permute.xlu0 %944  ;;  %v972_v20 = vmul.f32 %v1138_v6, %v970_v62  ;;  %v1142_v22 = vld [vmem:[%s1730_s1 + $0x230] sm:$0x7f]  ;;  %v1143_v23 = vld [vmem:[%s1730_s1 + $0x238] sm:$0x7f] }
 0x35a   :  { %v900_v37 = vadd.f32 %v897_v28, %v887_v27  ;;  %v934_v59 = vmul.f32 %v1129_v47, %v932_v25  ;;  %v935_v1 = vmul.f32 %v1130_v50, %v932_v25  ;;  %v936_v42 = vmul.f32 %v1131_v51, %v932_v25  ;;  %v1144_v28 = vld [vmem:[%s1730_s1 + $0x240] sm:$0x7f]  ;;  %v1150_v47 = vld [vmem:[%s1730_s1 + $0x270] sm:$0x7f] }
 0x35b   :  { %v901_v44 = vadd.f32 %v898_v31, %v888_v29  ;;  %v902_v46 = vadd.f32 %v899_v33, %v889_v30  ;;  %v947_v5 = vmul.f32 %v1132_v56, %v945_v57  ;;  %v948_v8 = vmul.f32 %v1133_v60, %v945_v57  ;;  %v1145_v31 = vld [vmem:[%s1730_s1 + $0x248] sm:$0x7f]  ;;  %v1146_v33 = vld [vmem:[%s1730_s1 + $0x250] sm:$0x7f] }
 0x35c   :  { %v913_v48 = vadd.f32 %v910_v40, %v900_v37  ;;  %v949_v9 = vmul.f32 %v1134_v61, %v945_v57 }
 0x35d   :  { %v914_v52 = vadd.f32 %v911_v39, %v901_v44  ;;  %v915_v53 = vadd.f32 %v912_v41, %v902_v46  ;;  %v998_v41 = vmul.f32 %v1144_v28, %v1442_v45  ;;  %v1148_v44 = vld [vmem:[%s1730_s1 + $0x260] sm:$0x7f]  ;;  %v1149_v46 = vld [vmem:[%s1730_s1 + $0x268] sm:$0x7f] }
 0x35e   :  { %v923_v58 = vadd.f32 %v920_v49, %v913_v48  ;;  %v1151_v48 = vld [vmem:[%s1730_s1 + $0x278] sm:$0x7f]  ;;  %v1022_v49 = vpop.permute.xlu2 %1021 }
 0x35f   :  { %v924_v63 = vadd.f32 %v921_v54, %v914_v52  ;;  %v925_v0 = vadd.f32 %v922_v55, %v915_v53  ;;  %v999_v52 = vmul.f32 %v1145_v31, %v1442_v45  ;;  %v1000_v53 = vmul.f32 %v1146_v33, %v1442_v45  ;;  %v1152_v54 = vld [vmem:[%s1730_s1 + $0x280] sm:$0x7f]  ;;  %s1191_s1 = smov 128  }
 0x360   :  { %v937_v36 = vadd.f32 %v934_v59, %v923_v58  ;;  %v1024_v61 = vmul.f32 %v1150_v47, %v1022_v49  ;;  %v1025_v62 = vmul.f32 %v1151_v48, %v1022_v49  ;;  %v1026_v45 = vmul.f32 %v1152_v54, %v1022_v49 }
 0x361   :  { %v938_v7 = vadd.f32 %v935_v1, %v924_v63  ;;  %v939_v32 = vadd.f32 %v936_v42, %v925_v0  ;;  %v983_v19 = vpop.permute.xlu1 %982  ;;  %v1009_v38 = vpop.permute.xlu0 %1008 }
 0x362   :  { %v950_v13 = vadd.f32 %v947_v5, %v937_v36  ;;  %v985_v30 = vmul.f32 %v1141_v18, %v983_v19  ;;  %v986_v40 = vmul.f32 %v1142_v22, %v983_v19  ;;  %v987_v37 = vmul.f32 %v1143_v23, %v983_v19 }
 0x363   :  { %v951_v16 = vadd.f32 %v948_v8, %v938_v7  ;;  %v952_v17 = vadd.f32 %v949_v9, %v939_v32  ;;  %v1011_v56 = vmul.f32 %v1147_v34, %v1009_v38  ;;  %v1012_v59 = vmul.f32 %v1148_v44, %v1009_v38 }
 0x364   :  { %v962_v21 = vadd.f32 %v959_v12, %v950_v13  ;;  %v1013_v60 = vmul.f32 %v1149_v46, %v1009_v38 }
 0x365   :  { %v963_v43 = vadd.f32 %v960_v14, %v951_v16  ;;  %v964_v27 = vadd.f32 %v961_v15, %v952_v17 }
 0x366   :  { %v975_v29 = vadd.f32 %v972_v20, %v962_v21 }
 0x367   :  { %v976_v35 = vadd.f32 %v973_v24, %v963_v43  ;;  %v977_v25 = vadd.f32 %v974_v26, %v964_v27 }
 0x368   :  { %v988_v39 = vadd.f32 %v985_v30, %v975_v29 }
 0x369   :  { %v989_v50 = vadd.f32 %v986_v40, %v976_v35  ;;  %v990_v51 = vadd.f32 %v987_v37, %v977_v25 }
 0x36a   :  { %v1001_v55 = vadd.f32 %v998_v41, %v988_v39 }
 0x36b   :  { %v1002_v57 = vadd.f32 %v999_v52, %v989_v50  ;;  %v1003_v58 = vadd.f32 %v1000_v53, %v990_v51 }
 0x36c   :  { %v1014_v63 = vadd.f32 %v1011_v56, %v1001_v55 }
 0x36d   :  { %v1015_v0 = vadd.f32 %v1012_v59, %v1002_v57  ;;  %v1016_v1 = vadd.f32 %v1013_v60, %v1003_v58 }
 0x36e   :  { %v1027_v42 = vadd.f32 %v1024_v61, %v1014_v63 }
 0x36f   :  { %v1028_v2 = vadd.f32 %v1025_v62, %v1015_v0  ;;  %v1029_v36 = vadd.f32 %v1026_v45, %v1016_v1 }
 0x370   :  { %1031 = vst.msk [vmem:[#allocation5] sm:$0x7f] %vm1030_vm7, %v1027_v42 }
 0x371   :  { %1032 = vst.msk [vmem:[#allocation5 + $0x8] sm:$0x7f] %vm1030_vm7, %v1028_v2 }
 0x372   :  { %1033 = vst.msk [vmem:[#allocation5 + $0x10] sm:$0x7f] %vm1030_vm7, %v1029_v36 }
 0x373   :  { %1046 = dma.vmem_to_hbm [thread:$0]  %s1039_s4, 384, %s1041_s6, [#allocation6], %s1191_s1, %s1191_s1, %s1192_s7  }
 0x374   :  { %1184 = dma.done.wait [#allocation6], 384  }
 0x375   :  { %1185 = vsyncadd [#allocation6], 4294966912 }
 0x376   :  { %1051 = vsyncpa [#allocation6], 1 }

</bundles_post_ra>
